<compile_context>
chip_gen: v5e
topology: v5e:2x2
jax: 0.10.0
libtpu: 0.0.40
codegen_flags: <defaults>
</compile_context>

<pallas_src>
import jax
import jax.numpy as jnp
from jax.experimental import pallas as pl
from jax.experimental.pallas import tpu as pltpu


# ---------------------------------------------------------------------------
# sizes (hidden_dim = o_dim // 2, per the module)
# ---------------------------------------------------------------------------
OBS_DIM = 64                 # raw observation feature dim fed to obs_net
O_DIM = 32                   # obs_net.o_dim
HID = O_DIM // 2             # hidden_dim = 16
H2 = 2 * HID                 # hidden_dim * 2 = 32
EPS = 1e-5                   # PyTorch LayerNorm default eps

# weight-slab row offsets (slab is (W_ROWS, 64) bf16)
RW_ENC = 0                   # obs_net encoder  Linear(64, 32)
RW_1O = RW_ENC + OBS_DIM     # 64  : obs_munet  Linear(32, 32), output lanes 0:32
RW_1G = RW_1O + O_DIM        # 96  : goal_munet Linear(32, 32), output lanes 32:64
RW_2 = RW_1G + O_DIM         # 128 : blockdiag(obs Linear(32,16), goal Linear(32,16))
RW_F1 = RW_2 + 2 * H2        # 192 : final_net  Linear(32, 16)
W_ROWS = RW_F1 + H2          # 224
W_COLS = 2 * H2              # 64
P_ROWS = 16                  # bias / LN slab rows (padded)


def _round_up(x, m):
    return (x + m - 1) // m * m


def _layernorm(x, gamma, beta):
    mean = jnp.mean(x, axis=-1, keepdims=True)
    var = jnp.mean((x - mean) ** 2, axis=-1, keepdims=True)
    return (x - mean) * jax.lax.rsqrt(var + EPS) * gamma + beta


# ---------------------------------------------------------------------------
# kernel
# ---------------------------------------------------------------------------
def goal_critic_kernel(obs_ref, goal_ref, w_ref, p_ref, out_ref):
    f32 = jnp.float32
    bf16 = jnp.bfloat16

    # packed fused weights (bf16 matmul operands)
    w_enc = w_ref[RW_ENC:RW_1O, 0:H2]        # (64, 32) obs_net encoder
    w1o = w_ref[RW_1O:RW_1G, :]              # (32, 64) obs stage-1, lanes 0:32 live
    w1g = w_ref[RW_1G:RW_2, :]               # (32, 64) goal stage-1, lanes 32:64 live
    w2 = w_ref[RW_2:RW_F1, 0:H2]             # (64, 32) blockdiag(w2_obs, w2_goal)
    wf1 = w_ref[RW_F1:W_ROWS, 0:HID]         # (32, 16) final-net first linear

    # packed biases / LayerNorm params (f32)
    b_enc = p_ref[0:1, 0:H2]                 # (1, 32)
    b1 = p_ref[1:2, :]                       # (1, 64) [b1_obs | b1_goal]
    g1 = p_ref[2:3, :]                       # (1, 64) [gamma1_obs | gamma1_goal]
    be1 = p_ref[3:4, :]                      # (1, 64) [beta1_obs  | beta1_goal]
    b2 = p_ref[4:5, 0:H2]                    # (1, 32) [b2_obs | b2_goal]
    bf1 = p_ref[5:6, 0:HID]
    gf1 = p_ref[6:7, 0:HID]
    bef1 = p_ref[7:8, 0:HID]
    wf2r = p_ref[8:9, 0:HID]                 # (1, 16) final Linear(16,1) weight row
    bf2 = p_ref[9:10, 0:1]                   # (1, 1)

    # inputs: cast to bf16 in-kernel (wrapper does no concat/cast/pad pass)
    obs = obs_ref[...].astype(bf16)          # (tb, 64)
    goal = goal_ref[...].astype(bf16)        # (tb, 32)

    # obs_net encoder: Linear(64 -> 32) + ReLU
    enc = jnp.maximum(
        jnp.dot(obs, w_enc, preferred_element_type=f32) + b_enc, 0.0)   # (tb, 32)

    # stage 1 (fused obs/goal branches): Linear(32 -> 32) each, packed to 64 lanes
    h1 = (jnp.dot(enc.astype(bf16), w1o, preferred_element_type=f32)
          + jnp.dot(goal, w1g, preferred_element_type=f32) + b1)        # (tb, 64)

    # segmented LayerNorm over the two 32-lane halves (one-pass E[x^2]-m^2),
    # then ReLU (Dropout(0.1) = identity in eval mode).
    lane = jax.lax.broadcasted_iota(jnp.int32, h1.shape, 1)
    left = lane < H2
    zeros = jnp.zeros_like(h1)
    h1sq = h1 * h1
    s_all = jnp.sum(h1, axis=-1, keepdims=True)
    s_l = jnp.sum(jnp.where(left, h1, zeros), axis=-1, keepdims=True)
    q_all = jnp.sum(h1sq, axis=-1, keepdims=True)
    q_l = jnp.sum(jnp.where(left, h1sq, zeros), axis=-1, keepdims=True)
    inv_n = 1.0 / H2
    m_l = s_l * inv_n
    m_r = (s_all - s_l) * inv_n
    v_l = jnp.maximum(q_l * inv_n - m_l * m_l, 0.0)
    v_r = jnp.maximum((q_all - q_l) * inv_n - m_r * m_r, 0.0)
    r_l = jax.lax.rsqrt(v_l + EPS)
    r_r = jax.lax.rsqrt(v_r + EPS)
    mean = jnp.where(left, m_l, m_r)
    rstd = jnp.where(left, r_l, r_r)
    h1 = jnp.maximum((h1 - mean) * rstd * g1 + be1, 0.0)                # (tb, 64)

    # stage 2 (fused): block-diagonal Linear(32 -> 16) per branch, ReLU
    h2 = jnp.maximum(
        jnp.dot(h1.astype(bf16), w2, preferred_element_type=f32) + b2, 0.0)  # (tb, 32)

    # final_net: Linear(32 -> 16) -> LayerNorm(16) -> ReLU
    f = jnp.dot(h2.astype(bf16), wf1, preferred_element_type=f32) + bf1      # (tb, 16)
    inv_h = 1.0 / HID
    fs = jnp.sum(f, axis=-1, keepdims=True)
    fq = jnp.sum(f * f, axis=-1, keepdims=True)
    fm = fs * inv_h
    fv = jnp.maximum(fq * inv_h - fm * fm, 0.0)
    f = jnp.maximum((f - fm) * jax.lax.rsqrt(fv + EPS) * gf1 + bef1, 0.0)    # (tb, 16)

    # final Linear(16 -> 1) as (1,16) x (tb,16)^T on the (idle) MXU: the
    # result is already lane-dense (batch on lanes), so the store is unmasked.
    v_row = jax.lax.dot_general(
        wf2r, f, (((1,), (1,)), ((), ())), preferred_element_type=f32)       # (1, tb)
    out_ref[...] = v_row + bf2


# ---------------------------------------------------------------------------
# wrapper
# ---------------------------------------------------------------------------
def goal_critic_forward(obs, latent_goal, packed_params, *, tb=2048):
    """obs: (B, OBS_DIM) f32, latent_goal: (B, O_DIM) f32 -> (B, 1) f32."""
    w_slab, p_slab = packed_params
    Bn = obs.shape[0]

    # Large tiles amortize the ~0.35us/grid-step pipeline overhead.  Small
    # batches use a single tile covering the whole batch (no forced grid
    # split: v5e/v6e have one TensorCore, so extra steps are pure overhead).
    tb = max(128, _round_up(tb, 128))
    if Bn <= tb:
        tb_eff, n_tiles = Bn, 1
    else:
        tb_eff, n_tiles = tb, pl.cdiv(Bn, tb)

    macs_per_row = (OBS_DIM * O_DIM + 2 * O_DIM * H2 + 2 * H2 * HID
                    + 2 * HID * HID + HID)
    cost = pl.CostEstimate(
        flops=int(2 * macs_per_row * Bn),
        transcendentals=int(3 * Bn),
        bytes_accessed=int(Bn * (OBS_DIM + O_DIM) * 4 + Bn * 4
                           + int(w_slab.size) * 2 + int(p_slab.size) * 4))

    out = pl.pallas_call(
        goal_critic_kernel,
        out_shape=jax.ShapeDtypeStruct((1, Bn), jnp.float32),
        grid_spec=pltpu.PrefetchScalarGridSpec(
            num_scalar_prefetch=0,
            grid=(n_tiles,),
            in_specs=[
                pl.BlockSpec((tb_eff, OBS_DIM), lambda i: (i, 0)),
                pl.BlockSpec((tb_eff, O_DIM), lambda i: (i, 0)),
                # grid-invariant parameter slabs (constant index_map -> the
                # pipeliner elides per-step refetch of the ~30 KB of weights)
                pl.BlockSpec(w_slab.shape, lambda i: (0, 0)),
                pl.BlockSpec(p_slab.shape, lambda i: (0, 0)),
            ],
            out_specs=pl.BlockSpec((1, tb_eff), lambda i: (0, i)),
        ),
        compiler_params=pltpu.CompilerParams(dimension_semantics=("parallel",)),
        cost_estimate=cost,
    )(obs, latent_goal, w_slab, p_slab)
    return out.reshape(Bn, 1)


# ---------------------------------------------------------------------------
# parameters
# ---------------------------------------------------------------------------
def make_params(key):
    """Deterministic synthetic parameters in the natural (unpacked) layout."""
    ks = jax.random.split(key, 20)

    def nrm(k, shape, scale=0.1):
        return (scale * jax.random.normal(k, shape)).astype(jnp.float32)

    # obs_net encoder: Linear(OBS_DIM, O_DIM) + ReLU
    w_enc = nrm(ks[0], (OBS_DIM, O_DIM)); b_enc = nrm(ks[1], (1, O_DIM))
    # obs_munet
    w1o = nrm(ks[2], (O_DIM, H2)); b1o = nrm(ks[3], (1, H2))
    g1o = 1.0 + nrm(ks[4], (1, H2)); be1o = nrm(ks[5], (1, H2))
    w2o = nrm(ks[6], (H2, HID)); b2o = nrm(ks[7], (1, HID))
    # goal_munet
    w1g = nrm(ks[8], (O_DIM, H2)); b1g = nrm(ks[9], (1, H2))
    g1g = 1.0 + nrm(ks[10], (1, H2)); be1g = nrm(ks[11], (1, H2))
    w2g = nrm(ks[12], (H2, HID)); b2g = nrm(ks[13], (1, HID))
    # final_net
    wf1 = nrm(ks[14], (2 * HID, HID)); bf1 = nrm(ks[15], (1, HID))
    gf1 = 1.0 + nrm(ks[16], (1, HID)); bef1 = nrm(ks[17], (1, HID))
    wf2 = nrm(ks[18], (HID, 1)); bf2 = nrm(ks[19], (1, 1))

    return (w_enc, b_enc, w1o, b1o, g1o, be1o, w2o, b2o,
            w1g, b1g, g1g, be1g, w2g, b2g, wf1, bf1, gf1, bef1, wf2, bf2)


def pack_params(raw):
    """Pack all parameters into one bf16 weight slab and one f32 bias/LN slab."""
    (w_enc, b_enc, w1o, b1o, g1o, be1o, w2o, b2o,
     w1g, b1g, g1g, be1g, w2g, b2g, wf1, bf1, gf1, bef1, wf2, bf2) = raw

    W = jnp.zeros((W_ROWS, W_COLS), jnp.float32)
    W = W.at[RW_ENC:RW_1O, 0:H2].set(w_enc)          # encoder
    W = W.at[RW_1O:RW_1G, 0:H2].set(w1o)             # obs stage-1 -> lanes 0:32
    W = W.at[RW_1G:RW_2, H2:2 * H2].set(w1g)         # goal stage-1 -> lanes 32:64
    W = W.at[RW_2:RW_2 + H2, 0:HID].set(w2o)         # blockdiag stage-2 (obs)
    W = W.at[RW_2 + H2:RW_F1, HID:H2].set(w2g)       # blockdiag stage-2 (goal)
    W = W.at[RW_F1:W_ROWS, 0:HID].set(wf1)           # final-net first linear

    P = jnp.zeros((P_ROWS, W_COLS), jnp.float32)
    P = P.at[0, 0:H2].set(b_enc[0])
    P = P.at[1, 0:H2].set(b1o[0]);  P = P.at[1, H2:].set(b1g[0])
    P = P.at[2, 0:H2].set(g1o[0]);  P = P.at[2, H2:].set(g1g[0])
    P = P.at[3, 0:H2].set(be1o[0]); P = P.at[3, H2:].set(be1g[0])
    P = P.at[4, 0:HID].set(b2o[0]); P = P.at[4, HID:H2].set(b2g[0])
    P = P.at[5, 0:HID].set(bf1[0])
    P = P.at[6, 0:HID].set(gf1[0])
    P = P.at[7, 0:HID].set(bef1[0])
    P = P.at[8, 0:HID].set(wf2[:, 0])
    P = P.at[9, 0].set(bf2[0, 0])

    return W.astype(jnp.bfloat16), P


# ---------------------------------------------------------------------------
# pure-JAX reference (f32, unfused — mirrors the PyTorch module)
# ---------------------------------------------------------------------------
def reference_forward(obs, goal, raw):
    (w_enc, b_enc, w1o, b1o, g1o, be1o, w2o, b2o,
     w1g, b1g, g1g, be1g, w2g, b2g, wf1, bf1, gf1, bef1, wf2, bf2) = raw
    obs_out = jnp.maximum(obs @ w_enc + b_enc, 0.0)
    a = jnp.maximum(_layernorm(obs_out @ w1o + b1o, g1o, be1o), 0.0)
    a = jnp.maximum(a @ w2o + b2o, 0.0)
    b = jnp.maximum(_layernorm(goal @ w1g + b1g, g1g, be1g), 0.0)
    b = jnp.maximum(b @ w2g + b2g, 0.0)
    f = jnp.concatenate([a, b], axis=1) @ wf1 + bf1
    f = jnp.maximum(_layernorm(f, gf1, bef1), 0.0)
    return f @ wf2 + bf2


if __name__ == "__main__":
    key = jax.random.PRNGKey(0)
    k_obs, k_goal, k_params, k_obs2, k_goal2 = jax.random.split(key, 5)

    raw_params = make_params(k_params)
    packed_params = pack_params(raw_params)

    # --- small batch: single-tile path (no grid split, no padding) ---
    B = 64
    obs = jax.random.normal(k_obs, (B, OBS_DIM), dtype=jnp.float32)
    latent_goal = jax.random.normal(k_goal, (B, O_DIM), dtype=jnp.float32)

    v_s = goal_critic_forward(obs, latent_goal, packed_params)
    v_s = jax.block_until_ready(v_s)
    ref = reference_forward(obs, latent_goal, raw_params)
    assert v_s.shape == (B, 1)
    # bf16 matmul operands in the kernel vs. a pure-f32 reference -> loosened tolerance.
    err = float(jnp.max(jnp.abs(v_s - ref)))
    assert jnp.allclose(v_s, ref, atol=5e-2, rtol=5e-2), err

    # --- ragged multi-tile path (grid=2, masked trailing block, lane-dense out) ---
    B2, tb2 = 200, 128
    obs2 = jax.random.normal(k_obs2, (B2, OBS_DIM), dtype=jnp.float32)
    latent_goal2 = jax.random.normal(k_goal2, (B2, O_DIM), dtype=jnp.float32)
    v_s2 = goal_critic_forward(obs2, latent_goal2, packed_params, tb=tb2)
    v_s2 = jax.block_until_ready(v_s2)
    ref2 = reference_forward(obs2, latent_goal2, raw_params)
    assert v_s2.shape == (B2, 1)
    err2 = float(jnp.max(jnp.abs(v_s2 - ref2)))
    assert jnp.allclose(v_s2, ref2, atol=5e-2, rtol=5e-2), err2

    print("KERNEL_OK")
</pallas_src>

<mosaic_0001>
module attributes {stable_mosaic.version = 11 : i64} {
  func.func @goal_critic_kernel(%arg0: i32, %arg1: memref<64x64xf32, #tpu.memory_space<vmem>>, %arg2: memref<64x32xf32, #tpu.memory_space<vmem>>, %arg3: memref<224x64xbf16, #tpu.memory_space<vmem>>, %arg4: memref<16x64xf32, #tpu.memory_space<vmem>>, %arg5: memref<1x64xf32, #tpu.memory_space<vmem>>) attributes {dimension_semantics = [#tpu.dimension_semantics<parallel>], iteration_bounds = array<i64: 1>, scalar_prefetch = 0 : i64, scratch_operands = 0 : i64, tpu.core_type = #tpu.core_type<tc>, window_params = [{transform_indices = @transform_0, window_bounds = array<i64: 64, 64>}, {transform_indices = @transform_1, window_bounds = array<i64: 64, 32>}, {pipeline_mode = #tpu.pipeline_mode<synchronous>, transform_indices = @transform_2, window_bounds = array<i64: 224, 64>}, {pipeline_mode = #tpu.pipeline_mode<synchronous>, transform_indices = @transform_3, window_bounds = array<i64: 16, 64>}, {transform_indices = @transform_4, window_bounds = array<i64: 1, 64>}]} {
    %c0 = arith.constant 0 : index
    %c0_0 = arith.constant 0 : index
    %0 = vector.load %arg3[%c0, %c0_0] : memref<224x64xbf16, #tpu.memory_space<vmem>>, vector<64x32xbf16>
    %c64 = arith.constant 64 : index
    %c0_1 = arith.constant 0 : index
    %1 = vector.load %arg3[%c64, %c0_1] : memref<224x64xbf16, #tpu.memory_space<vmem>>, vector<32x64xbf16>
    %c96 = arith.constant 96 : index
    %c0_2 = arith.constant 0 : index
    %2 = vector.load %arg3[%c96, %c0_2] : memref<224x64xbf16, #tpu.memory_space<vmem>>, vector<32x64xbf16>
    %c128 = arith.constant 128 : index
    %c0_3 = arith.constant 0 : index
    %3 = vector.load %arg3[%c128, %c0_3] : memref<224x64xbf16, #tpu.memory_space<vmem>>, vector<64x32xbf16>
    %c192 = arith.constant 192 : index
    %c0_4 = arith.constant 0 : index
    %4 = vector.load %arg3[%c192, %c0_4] : memref<224x64xbf16, #tpu.memory_space<vmem>>, vector<32x16xbf16>
    %c0_5 = arith.constant 0 : index
    %c0_6 = arith.constant 0 : index
    %5 = vector.load %arg4[%c0_5, %c0_6] : memref<16x64xf32, #tpu.memory_space<vmem>>, vector<1x32xf32>
    %c1 = arith.constant 1 : index
    %c0_7 = arith.constant 0 : index
    %6 = vector.load %arg4[%c1, %c0_7] : memref<16x64xf32, #tpu.memory_space<vmem>>, vector<1x64xf32>
    %c2 = arith.constant 2 : index
    %c0_8 = arith.constant 0 : index
    %7 = vector.load %arg4[%c2, %c0_8] : memref<16x64xf32, #tpu.memory_space<vmem>>, vector<1x64xf32>
    %c3 = arith.constant 3 : index
    %c0_9 = arith.constant 0 : index
    %8 = vector.load %arg4[%c3, %c0_9] : memref<16x64xf32, #tpu.memory_space<vmem>>, vector<1x64xf32>
    %c4 = arith.constant 4 : index
    %c0_10 = arith.constant 0 : index
    %9 = vector.load %arg4[%c4, %c0_10] : memref<16x64xf32, #tpu.memory_space<vmem>>, vector<1x32xf32>
    %c5 = arith.constant 5 : index
    %c0_11 = arith.constant 0 : index
    %10 = vector.load %arg4[%c5, %c0_11] : memref<16x64xf32, #tpu.memory_space<vmem>>, vector<1x16xf32>
    %c6 = arith.constant 6 : index
    %c0_12 = arith.constant 0 : index
    %11 = vector.load %arg4[%c6, %c0_12] : memref<16x64xf32, #tpu.memory_space<vmem>>, vector<1x16xf32>
    %c7 = arith.constant 7 : index
    %c0_13 = arith.constant 0 : index
    %12 = vector.load %arg4[%c7, %c0_13] : memref<16x64xf32, #tpu.memory_space<vmem>>, vector<1x16xf32>
    %c8 = arith.constant 8 : index
    %c0_14 = arith.constant 0 : index
    %13 = vector.load %arg4[%c8, %c0_14] : memref<16x64xf32, #tpu.memory_space<vmem>>, vector<1x16xf32>
    %c9 = arith.constant 9 : index
    %c0_15 = arith.constant 0 : index
    %14 = vector.load %arg4[%c9, %c0_15] : memref<16x64xf32, #tpu.memory_space<vmem>>, vector<1x1xf32>
    %c0_16 = arith.constant 0 : index
    %c0_17 = arith.constant 0 : index
    %15 = vector.load %arg1[%c0_16, %c0_17] : memref<64x64xf32, #tpu.memory_space<vmem>>, vector<64x64xf32>
    %16 = arith.truncf %15 : vector<64x64xf32> to vector<64x64xbf16>
    %c0_18 = arith.constant 0 : index
    %c0_19 = arith.constant 0 : index
    %17 = vector.load %arg2[%c0_18, %c0_19] : memref<64x32xf32, #tpu.memory_space<vmem>>, vector<64x32xf32>
    %18 = arith.truncf %17 : vector<64x32xf32> to vector<64x32xbf16>
    %cst = arith.constant dense<0.000000e+00> : vector<64x32xf32>
    %19 = tpu.matmul %16, %0, %cst {dimension_numbers = #tpu.dot_dimension_numbers<[1], [0], [0], [1], [0, 0, 1, 1], [], []>} : vector<64x64xbf16>, vector<64x32xbf16>, vector<64x32xf32> -> vector<64x32xf32>
    %20 = vector.broadcast %5 : vector<1x32xf32> to vector<64x32xf32>
    %21 = arith.addf %19, %20 : vector<64x32xf32>
    %cst_20 = arith.constant 0.000000e+00 : f32
    %22 = vector.broadcast %cst_20 : f32 to vector<64x32xf32>
    %23 = arith.maximumf %21, %22 : vector<64x32xf32>
    %24 = arith.truncf %23 : vector<64x32xf32> to vector<64x32xbf16>
    %cst_21 = arith.constant dense<0.000000e+00> : vector<64x64xf32>
    %25 = tpu.matmul %24, %1, %cst_21 {dimension_numbers = #tpu.dot_dimension_numbers<[1], [0], [0], [1], [0, 0, 1, 1], [], []>} : vector<64x32xbf16>, vector<32x64xbf16>, vector<64x64xf32> -> vector<64x64xf32>
    %cst_22 = arith.constant dense<0.000000e+00> : vector<64x64xf32>
    %26 = tpu.matmul %18, %2, %cst_22 {dimension_numbers = #tpu.dot_dimension_numbers<[1], [0], [0], [1], [0, 0, 1, 1], [], []>} : vector<64x32xbf16>, vector<32x64xbf16>, vector<64x64xf32> -> vector<64x64xf32>
    %27 = arith.addf %25, %26 : vector<64x64xf32>
    %28 = vector.broadcast %6 : vector<1x64xf32> to vector<64x64xf32>
    %29 = arith.addf %27, %28 : vector<64x64xf32>
    %30 = tpu.iota {dimensions = array<i32: 1>} : vector<64x64xi32>
    %c32_i32 = arith.constant 32 : i32
    %31 = vector.broadcast %c32_i32 : i32 to vector<64x64xi32>
    %32 = arith.cmpi slt, %30, %31 : vector<64x64xi32>
    %cst_23 = arith.constant 0.000000e+00 : f32
    %33 = vector.broadcast %cst_23 : f32 to vector<64x64xf32>
    %34 = arith.mulf %29, %29 : vector<64x64xf32>
    %cst_24 = arith.constant dense<0.000000e+00> : vector<64xf32>
    %35 = vector.multi_reduction <add>, %29, %cst_24 [1] : vector<64x64xf32> to vector<64xf32>
    %36 = vector.shape_cast %35 : vector<64xf32> to vector<64x1xf32>
    %37 = arith.select %32, %29, %33 : vector<64x64xi1>, vector<64x64xf32>
    %cst_25 = arith.constant dense<0.000000e+00> : vector<64xf32>
    %38 = vector.multi_reduction <add>, %37, %cst_25 [1] : vector<64x64xf32> to vector<64xf32>
    %39 = vector.shape_cast %38 : vector<64xf32> to vector<64x1xf32>
    %cst_26 = arith.constant dense<0.000000e+00> : vector<64xf32>
    %40 = vector.multi_reduction <add>, %34, %cst_26 [1] : vector<64x64xf32> to vector<64xf32>
    %41 = vector.shape_cast %40 : vector<64xf32> to vector<64x1xf32>
    %42 = arith.select %32, %34, %33 : vector<64x64xi1>, vector<64x64xf32>
    %cst_27 = arith.constant dense<0.000000e+00> : vector<64xf32>
    %43 = vector.multi_reduction <add>, %42, %cst_27 [1] : vector<64x64xf32> to vector<64xf32>
    %44 = vector.shape_cast %43 : vector<64xf32> to vector<64x1xf32>
    %cst_28 = arith.constant 3.125000e-02 : f32
    %45 = vector.broadcast %cst_28 : f32 to vector<64x1xf32>
    %46 = arith.mulf %39, %45 : vector<64x1xf32>
    %47 = arith.subf %36, %39 : vector<64x1xf32>
    %cst_29 = arith.constant 3.125000e-02 : f32
    %48 = vector.broadcast %cst_29 : f32 to vector<64x1xf32>
    %49 = arith.mulf %47, %48 : vector<64x1xf32>
    %cst_30 = arith.constant 3.125000e-02 : f32
    %50 = vector.broadcast %cst_30 : f32 to vector<64x1xf32>
    %51 = arith.mulf %44, %50 : vector<64x1xf32>
    %52 = arith.mulf %46, %46 : vector<64x1xf32>
    %53 = arith.subf %51, %52 : vector<64x1xf32>
    %cst_31 = arith.constant 0.000000e+00 : f32
    %54 = vector.broadcast %cst_31 : f32 to vector<64x1xf32>
    %55 = arith.maximumf %53, %54 : vector<64x1xf32>
    %56 = arith.subf %41, %44 : vector<64x1xf32>
    %cst_32 = arith.constant 3.125000e-02 : f32
    %57 = vector.broadcast %cst_32 : f32 to vector<64x1xf32>
    %58 = arith.mulf %56, %57 : vector<64x1xf32>
    %59 = arith.mulf %49, %49 : vector<64x1xf32>
    %60 = arith.subf %58, %59 : vector<64x1xf32>
    %cst_33 = arith.constant 0.000000e+00 : f32
    %61 = vector.broadcast %cst_33 : f32 to vector<64x1xf32>
    %62 = arith.maximumf %60, %61 : vector<64x1xf32>
    %cst_34 = arith.constant 9.99999974E-6 : f32
    %63 = vector.broadcast %cst_34 : f32 to vector<64x1xf32>
    %64 = arith.addf %55, %63 : vector<64x1xf32>
    %65 = math.rsqrt %64 : vector<64x1xf32>
    %cst_35 = arith.constant 9.99999974E-6 : f32
    %66 = vector.broadcast %cst_35 : f32 to vector<64x1xf32>
    %67 = arith.addf %62, %66 : vector<64x1xf32>
    %68 = math.rsqrt %67 : vector<64x1xf32>
    %69 = vector.shape_cast %46 : vector<64x1xf32> to vector<64x1xf32>
    %70 = vector.broadcast %69 : vector<64x1xf32> to vector<64x64xf32>
    %71 = vector.shape_cast %49 : vector<64x1xf32> to vector<64x1xf32>
    %72 = vector.broadcast %71 : vector<64x1xf32> to vector<64x64xf32>
    %73 = arith.select %32, %70, %72 : vector<64x64xi1>, vector<64x64xf32>
    %74 = vector.shape_cast %65 : vector<64x1xf32> to vector<64x1xf32>
    %75 = vector.broadcast %74 : vector<64x1xf32> to vector<64x64xf32>
    %76 = vector.shape_cast %68 : vector<64x1xf32> to vector<64x1xf32>
    %77 = vector.broadcast %76 : vector<64x1xf32> to vector<64x64xf32>
    %78 = arith.select %32, %75, %77 : vector<64x64xi1>, vector<64x64xf32>
    %79 = arith.subf %29, %73 : vector<64x64xf32>
    %80 = arith.mulf %79, %78 : vector<64x64xf32>
    %81 = vector.broadcast %7 : vector<1x64xf32> to vector<64x64xf32>
    %82 = arith.mulf %80, %81 : vector<64x64xf32>
    %83 = vector.broadcast %8 : vector<1x64xf32> to vector<64x64xf32>
    %84 = arith.addf %82, %83 : vector<64x64xf32>
    %cst_36 = arith.constant 0.000000e+00 : f32
    %85 = vector.broadcast %cst_36 : f32 to vector<64x64xf32>
    %86 = arith.maximumf %84, %85 : vector<64x64xf32>
    %87 = arith.truncf %86 : vector<64x64xf32> to vector<64x64xbf16>
    %cst_37 = arith.constant dense<0.000000e+00> : vector<64x32xf32>
    %88 = tpu.matmul %87, %3, %cst_37 {dimension_numbers = #tpu.dot_dimension_numbers<[1], [0], [0], [1], [0, 0, 1, 1], [], []>} : vector<64x64xbf16>, vector<64x32xbf16>, vector<64x32xf32> -> vector<64x32xf32>
    %89 = vector.broadcast %9 : vector<1x32xf32> to vector<64x32xf32>
    %90 = arith.addf %88, %89 : vector<64x32xf32>
    %cst_38 = arith.constant 0.000000e+00 : f32
    %91 = vector.broadcast %cst_38 : f32 to vector<64x32xf32>
    %92 = arith.maximumf %90, %91 : vector<64x32xf32>
    %93 = arith.truncf %92 : vector<64x32xf32> to vector<64x32xbf16>
    %cst_39 = arith.constant dense<0.000000e+00> : vector<64x16xf32>
    %94 = tpu.matmul %93, %4, %cst_39 {dimension_numbers = #tpu.dot_dimension_numbers<[1], [0], [0], [1], [0, 0, 1, 1], [], []>} : vector<64x32xbf16>, vector<32x16xbf16>, vector<64x16xf32> -> vector<64x16xf32>
    %95 = vector.broadcast %10 : vector<1x16xf32> to vector<64x16xf32>
    %96 = arith.addf %94, %95 : vector<64x16xf32>
    %cst_40 = arith.constant dense<0.000000e+00> : vector<64xf32>
    %97 = vector.multi_reduction <add>, %96, %cst_40 [1] : vector<64x16xf32> to vector<64xf32>
    %98 = vector.shape_cast %97 : vector<64xf32> to vector<64x1xf32>
    %99 = arith.mulf %96, %96 : vector<64x16xf32>
    %cst_41 = arith.constant dense<0.000000e+00> : vector<64xf32>
    %100 = vector.multi_reduction <add>, %99, %cst_41 [1] : vector<64x16xf32> to vector<64xf32>
    %101 = vector.shape_cast %100 : vector<64xf32> to vector<64x1xf32>
    %cst_42 = arith.constant 6.250000e-02 : f32
    %102 = vector.broadcast %cst_42 : f32 to vector<64x1xf32>
    %103 = arith.mulf %98, %102 : vector<64x1xf32>
    %cst_43 = arith.constant 6.250000e-02 : f32
    %104 = vector.broadcast %cst_43 : f32 to vector<64x1xf32>
    %105 = arith.mulf %101, %104 : vector<64x1xf32>
    %106 = arith.mulf %103, %103 : vector<64x1xf32>
    %107 = arith.subf %105, %106 : vector<64x1xf32>
    %cst_44 = arith.constant 0.000000e+00 : f32
    %108 = vector.broadcast %cst_44 : f32 to vector<64x1xf32>
    %109 = arith.maximumf %107, %108 : vector<64x1xf32>
    %110 = vector.broadcast %103 : vector<64x1xf32> to vector<64x16xf32>
    %111 = arith.subf %96, %110 : vector<64x16xf32>
    %cst_45 = arith.constant 9.99999974E-6 : f32
    %112 = vector.broadcast %cst_45 : f32 to vector<64x1xf32>
    %113 = arith.addf %109, %112 : vector<64x1xf32>
    %114 = math.rsqrt %113 : vector<64x1xf32>
    %115 = vector.broadcast %114 : vector<64x1xf32> to vector<64x16xf32>
    %116 = arith.mulf %111, %115 : vector<64x16xf32>
    %117 = vector.broadcast %11 : vector<1x16xf32> to vector<64x16xf32>
    %118 = arith.mulf %116, %117 : vector<64x16xf32>
    %119 = vector.broadcast %12 : vector<1x16xf32> to vector<64x16xf32>
    %120 = arith.addf %118, %119 : vector<64x16xf32>
    %cst_46 = arith.constant 0.000000e+00 : f32
    %121 = vector.broadcast %cst_46 : f32 to vector<64x16xf32>
    %122 = arith.maximumf %120, %121 : vector<64x16xf32>
    %cst_47 = arith.constant dense<0.000000e+00> : vector<1x64xf32>
    %123 = tpu.matmul %13, %122, %cst_47 {dimension_numbers = #tpu.dot_dimension_numbers<[1], [1], [0], [0], [0, 0, 1, 0], [], []>} : vector<1x16xf32>, vector<64x16xf32>, vector<1x64xf32> -> vector<1x64xf32>
    %124 = vector.broadcast %14 : vector<1x1xf32> to vector<1x64xf32>
    %125 = arith.addf %123, %124 : vector<1x64xf32>
    %c0_48 = arith.constant 0 : index
    %c0_49 = arith.constant 0 : index
    %126 = vector.load %arg5[%c0_48, %c0_49] : memref<1x64xf32, #tpu.memory_space<vmem>>, vector<1x64xf32>
    tpu.vector_store %arg5[%c0_48, %c0_49], %125 {strides = array<i32>} : memref<1x64xf32, #tpu.memory_space<vmem>>, vector<1x64xf32>,
    return
  }
  func.func @transform_0(%arg0: i32) -> (i32, i32) {
    %c0_i32 = arith.constant 0 : i32
    %c0_i32_0 = arith.constant 0 : i32
    return %arg0, %c0_i32 : i32, i32
  }
  func.func @transform_1(%arg0: i32) -> (i32, i32) {
    %c0_i32 = arith.constant 0 : i32
    %c0_i32_0 = arith.constant 0 : i32
    return %arg0, %c0_i32 : i32, i32
  }
  func.func @transform_2(%arg0: i32) -> (i32, i32) {
    %c0_i32 = arith.constant 0 : i32
    %c0_i32_0 = arith.constant 0 : i32
    %c0_i32_1 = arith.constant 0 : i32
    return %c0_i32, %c0_i32_0 : i32, i32
  }
  func.func @transform_3(%arg0: i32) -> (i32, i32) {
    %c0_i32 = arith.constant 0 : i32
    %c0_i32_0 = arith.constant 0 : i32
    %c0_i32_1 = arith.constant 0 : i32
    return %c0_i32, %c0_i32_0 : i32, i32
  }
  func.func @transform_4(%arg0: i32) -> (i32, i32) {
    %c0_i32 = arith.constant 0 : i32
    %c0_i32_0 = arith.constant 0 : i32
    return %c0_i32, %arg0 : i32, i32
  }
}

</mosaic_0001>

<bundles_post_ra>
// kernel: tpu_custom_call.1
= control target key start
LH: loop header
LB: loop body
LE: loop exit
PB: predicated region body
PF: predicated region fallthrough
CT: control target
= control target key end

     0   :  { %s2168_s0 = inlined_call_operand.vmem [shape: f32[64,64], index: 0, kind: input, shape index: {}]   ;;  %s2169_s1 = inlined_call_operand.vmem [shape: f32[64,32], index: 1, kind: input, shape index: {}]   ;;  %s2170_s2 = inlined_call_operand.vmem [shape: bf16[224,64], index: 2, kind: input, shape index: {}]   ;;  %s2171_s3 = inlined_call_operand.vmem [shape: f32[16,64], index: 3, kind: input, shape index: {}]   ;;  %s2172_s4 = inlined_call_operand.hbm [shape: f32[1,64], index: 4, kind: output, shape index: {}]  }
   0x1   :  { %v1250_v0 = vld [vmem:[%s2170_s2 + $0x18] sm:$0xff]  ;;  %v1249_v1 = vld [vmem:[%s2170_s2 + $0x10] sm:$0xff]  ;;  %v1248_v2 = vld [vmem:[%s2170_s2 + $0x8] sm:$0xff] }
   0x2   :  { %123 = vmatpush.bf16.msra.mxu0 %v1250_v0 }
   0x6   :  { %124 = vmatpush.bf16.msra.mxu0 %v1249_v1 }
   0x7   :  { %9 = vsyncpa [#allocation3], 0  ;;  %v1247_v3 = vld [vmem:[%s2170_s2] sm:$0xff]  ;;  %v58_v5 = vld [vmem:[%s2168_s0 + $0x8] sm:$0xff]  ;;  %vm106_vm0 = vcmask 523264   ;;  %vm172_vm1 = vcmask 261120   ;;  %v276_v63 = vlaneseq }
   0x8   :  { %v57_v4 = vld [vmem:[%s2168_s0] sm:$0xff]  ;;  %v59_v7 = vld [vmem:[%s2168_s0 + $0x10] sm:$0xff]  ;;  %v60_v8 = vld [vmem:[%s2168_s0 + $0x18] sm:$0xff]  ;;  %s1353_s12 = smov [#allocation2]   ;;  %s1153_s16 = sshll.u32 %s2172_s4, 4  ;;  %s1154_s16 = int_to_ptr.hbm [resolvable:$true] %s1153_s16 }
   0x9   :  { %v65_v6 = vpack.c.bf16 %v58_v5, %v57_v4  ;;  %v66_v9 = vpack.c.bf16 %v60_v8, %v59_v7  ;;  %v1254_v10 = vld [vmem:[%s2170_s2 + $0x38] sm:$0xff]  ;;  %v1253_v11 = vld [vmem:[%s2170_s2 + $0x30] sm:$0xff]  ;;  %v73_v12 = vld [vmem:[%s2169_s1 + $0x20] sm:$0xff]  ;;  %v1468_v1 = vand.u32 127, %v276_v63  ;;  %s1151_s13 = sshll.u32 %s1353_s12, 4  ;;  %s1152_s13 = int_to_ptr.vmem [resolvable:$true] %s1151_s13 }
   0xa   :  { %125 = vmatpush.bf16.msra.mxu0 %v1248_v2  ;;  %1262 = vmatpush.bf16.msra.mxu2 %v1254_v10  ;;  %v74_v13 = vld [vmem:[%s2169_s1 + $0x28] sm:$0xff]  ;;  %v61_v15 = vld [vmem:[%s2168_s0 + $0x20] sm:$0xff]  ;;  %v63_v18 = vld [vmem:[%s2168_s0 + $0x30] sm:$0xff] }
   0xb   :  { %1261 = vmatpush.bf16.msra.mxu1 %v1254_v10  ;;  %1263 = vmatpush.bf16.msra.mxu3 %v1254_v10  ;;  %v79_v14 = vpack.c.bf16 %v74_v13, %v73_v12  ;;  %v62_v16 = vld [vmem:[%s2168_s0 + $0x28] sm:$0xff]  ;;  %v64_v19 = vld [vmem:[%s2168_s0 + $0x38] sm:$0xff]  ;;  %v1251_v22 = vld [vmem:[%s2170_s2 + $0x20] sm:$0xff]  ;;  %vm278_vm2 = vcmp.lt.s32.totalorder %v1468_v1, 32 }
   0xc   :  { %v67_v17 = vpack.c.bf16 %v62_v16, %v61_v15  ;;  %v68_v20 = vpack.c.bf16 %v64_v19, %v63_v18  ;;  %v1252_v21 = vld [vmem:[%s2170_s2 + $0x28] sm:$0xff]  ;;  %v69_v23 = vld [vmem:[%s2169_s1] sm:$0xff]  ;;  %v71_v27 = vld [vmem:[%s2169_s1 + $0x10] sm:$0xff] }
   0xd   :  { %v70_v24 = vld [vmem:[%s2169_s1 + $0x8] sm:$0xff]  ;;  %v72_v28 = vld [vmem:[%s2169_s1 + $0x18] sm:$0xff]  ;;  %v1270_v30 = vld [vmem:[%s2171_s3] ss:$0 sm:$0xff] }
   0xe   :  { %126 = vmatpush.bf16.msra.mxu0 %v1247_v3  ;;  %1265 = vmatpush.bf16.msra.mxu2 %v1253_v11  ;;  %v77_v25 = vpack.c.bf16 %v70_v24, %v69_v23  ;;  %v78_v29 = vpack.c.bf16 %v72_v28, %v71_v27  ;;  %v75_v43 = vld [vmem:[%s2169_s1 + $0x30] sm:$0xff]  ;;  %v76_v44 = vld [vmem:[%s2169_s1 + $0x38] sm:$0xff]  ;;  %v1473_v2 = vld [vmem:[%s2171_s3 + $0x1] ss:$0 sm:$0xff] }
   0xf   :  { %1264 = vmatpush.bf16.msra.mxu1 %v1253_v11  ;;  %1266 = vmatpush.bf16.msra.mxu3 %v1253_v11  ;;  %v80_v46 = vpack.c.bf16 %v76_v44, %v75_v43  ;;  %v1260_v1 = vld [vmem:[%s2170_s2 + $0x68] sm:$0xff] }
  0x11   :  { %1178 = vmatmul.msk.bf16.vlgmr.msra.gmra.mxu0 %vm106_vm0, %v65_v6  ;;  %1192 = vmatmul.msk.bf16.vlgmr.msra.gmra.mxu2 %vm172_vm1, %v79_v14 }
  0x12   :  { %191 = vmatpush.bf16.msrb.mxu0 %v1254_v10  ;;  %244 = vmatpush.bf16.msrb.mxu2 %v1252_v21 }
  0x13   :  { %1191 = vmatmul.msk.bf16.vlgmr.msra.gmra.mxu1 %vm172_vm1, %v78_v29  ;;  %1193 = vmatmul.msk.bf16.vlgmr.msra.gmra.mxu3 %vm172_vm1, %v80_v46 }
  0x14   :  { %842 = vmatpush.bf16.msrb.mxu1 %v1260_v1 }
  0x16   :  { %192 = vmatpush.bf16.msrb.mxu0 %v1253_v11  ;;  %245 = vmatpush.bf16.msrb.mxu2 %v1251_v22 }
  0x21   :  { %1179 = vmatmul.msk.bf16.gmra.mxu0 %vm106_vm0, %v66_v9 }
  0x31   :  { %1180 = vmatmul.msk.bf16.gmra.mxu0 %vm106_vm0, %v67_v17 }
  0x41   :  { %1181 = vmatmul.msk.bf16.gmra.mxu0 %vm106_vm0, %v68_v20 }
  0x51   :  { %1190 = vmatmul.msk.bf16.vlgmr.msrb.gmra.mxu0 %vm172_vm1, %v77_v25 }
  0x8e   :  { %v128_v26 = vpop.f32.mrf.mxu0 }
  0x8f   :  { %v129_v31 = vadd.f32 %v1270_v30, %v128_v26 }
  0x90   :  { %v199_v17 = vpop.f32.mrf.mxu1 }
  0x91   :  { %v148_v34 = vmax.f32 %v129_v31, 0.0 }
  0x94   :  { %v204_v61 = vpop.f32.mrf.mxu2 }
  0x96   :  { %v130_v32 = vpop.f32.mrf.mxu0 }
  0x97   :  { %v131_v33 = vadd.f32 %v1270_v30, %v130_v32 }
  0x98   :  { %v201_v28 = vpop.f32.mrf.mxu1 }
  0x99   :  { %v149_v35 = vmax.f32 %v131_v33, 0.0 }
  0x9b   :  { %v156_v36 = vpack.c.bf16 %v149_v35, %v148_v34 }
  0x9c   :  { %v1466_v62 = vpop.f32.mrf.mxu2 }
  0x9d   :  { %1202 = vmatmul.msk.bf16.vlgmr.msrb.gmra.mxu2 %vm172_vm1, %v156_v36 }
  0x9e   :  { %v133_v37 = vpop.f32.mrf.mxu0 }
  0x9f   :  { %v134_v38 = vadd.f32 %v1270_v30, %v133_v37 }
  0xa1   :  { %v150_v40 = vmax.f32 %v134_v38, 0.0 }
  0xa6   :  { %v135_v39 = vpop.f32.mrf.mxu0 }
  0xa7   :  { %v136_v41 = vadd.f32 %v1270_v30, %v135_v39 }
  0xa9   :  { %v151_v42 = vmax.f32 %v136_v41, 0.0 }
  0xab   :  { %v157_v45 = vpack.c.bf16 %v151_v42, %v150_v40 }
  0xad   :  { %1203 = vmatmul.msk.bf16.gmra.mxu2 %vm172_vm1, %v157_v45 }
  0xae   :  { %v138_v47 = vpop.f32.mrf.mxu0 }
  0xaf   :  { %v139_v48 = vadd.f32 %v1270_v30, %v138_v47 }
  0xb1   :  { %v152_v50 = vmax.f32 %v139_v48, 0.0 }
  0xb6   :  { %v140_v49 = vpop.f32.mrf.mxu0 }
  0xb7   :  { %v141_v51 = vadd.f32 %v1270_v30, %v140_v49 }
  0xb9   :  { %v153_v52 = vmax.f32 %v141_v51, 0.0 }
  0xbb   :  { %v158_v53 = vpack.c.bf16 %v153_v52, %v152_v50 }
  0xbd   :  { %1204 = vmatmul.msk.bf16.gmra.mxu2 %vm172_vm1, %v158_v53 }
  0xbe   :  { %v143_v54 = vpop.f32.mrf.mxu0 }
  0xbf   :  { %v144_v55 = vadd.f32 %v1270_v30, %v143_v54 }
  0xc1   :  { %v154_v57 = vmax.f32 %v144_v55, 0.0 }
  0xc6   :  { %v145_v56 = vpop.f32.mrf.mxu0 }
  0xc7   :  { %v146_v58 = vadd.f32 %v1270_v30, %v145_v56 }
  0xc9   :  { %v155_v59 = vmax.f32 %v146_v58, 0.0 }
  0xcb   :  { %v159_v60 = vpack.c.bf16 %v155_v59, %v154_v57  ;;  %v209_v57 = vpop.f32.mrf.mxu3 }
  0xcd   :  { %1205 = vmatmul.msk.bf16.gmra.mxu2 %vm172_vm1, %v159_v60 }
  0xce   :  { %v194_v0 = vpop.f32.mrf.mxu0 }
  0xd6   :  { %v196_v11 = vpop.f32.mrf.mxu0 }
 0x120   :  { %v247_v3 = vpop.f32.mrf.mxu2 }
 0x121   :  { %v248_v4 = vadd.f32 %v247_v3, %v194_v0 }
 0x123   :  { %v1477_v5 = vadd.f32 %v1473_v2, %v248_v4 }
 0x125   :  { %v287_v6 = vsel %vm106_vm0, %v1477_v5, 0.0  ;;  %v311_v7 = vsel %vm278_vm2, %v1477_v5, 0.0  ;;  %v279_v8 = vmul.f32 %v1477_v5, %v1477_v5 }
 0x126   :  { %288 = vadd.xlane.f32.xlu0 %v287_v6  ;;  %v319_v9 = vsel %vm106_vm0, %v311_v7, 0.0 }
 0x127   :  { %320 = vadd.xlane.f32.xlu1 %v319_v9  ;;  %v343_v10 = vsel %vm106_vm0, %v279_v8, 0.0  ;;  %v367_v14 = vsel %vm278_vm2, %v279_v8, 0.0  ;;  %v211_v8 = vpop.f32.mrf.mxu3 }
 0x128   :  { %v249_v12 = vpop.f32.mrf.mxu2  ;;  %344 = vadd.xlane.f32.xlu2 %v343_v10  ;;  %v375_v16 = vsel %vm106_vm0, %v367_v14, 0.0 }
 0x129   :  { %v250_v13 = vadd.f32 %v249_v12, %v196_v11 }
 0x12b   :  { %v1491_v15 = vadd.f32 %v1473_v2, %v250_v13 }
 0x12d   :  { %v312_v18 = vsel %vm278_vm2, %v1491_v15, 0.0  ;;  %v280_v19 = vmul.f32 %v1491_v15, %v1491_v15  ;;  %v290_v26 = vsel %vm106_vm0, %v1491_v15, 0.0 }
 0x12e   :  { %376 = vadd.xlane.f32.xlu0 %v375_v16  ;;  %v322_v20 = vsel %vm106_vm0, %v312_v18, 0.0 }
 0x12f   :  { %323 = vadd.xlane.f32.xlu1 %v322_v20  ;;  %v346_v21 = vsel %vm106_vm0, %v280_v19, 0.0  ;;  %v368_v25 = vsel %vm278_vm2, %v280_v19, 0.0 }
 0x130   :  { %v252_v22 = vpop.f32.mrf.mxu2  ;;  %347 = vadd.xlane.f32.xlu2 %v346_v21  ;;  %v378_v27 = vsel %vm106_vm0, %v368_v25, 0.0 }
 0x131   :  { %v253_v23 = vadd.f32 %v252_v22, %v199_v17 }
 0x133   :  { %v1502_v24 = vadd.f32 %v1473_v2, %v253_v23 }
 0x135   :  { %v293_v29 = vsel %vm106_vm0, %v1502_v24, 0.0  ;;  %v281_v31 = vmul.f32 %v1502_v24, %v1502_v24  ;;  %v313_v33 = vsel %vm278_vm2, %v1502_v24, 0.0 }
 0x136   :  { %291 = vadd.xlane.f32.xlu0 %v290_v26  ;;  %v325_v37 = vsel %vm106_vm0, %v313_v33, 0.0 }
 0x137   :  { %379 = vadd.xlane.f32.xlu1 %v378_v27  ;;  %v369_v34 = vsel %vm278_vm2, %v281_v31, 0.0  ;;  %v349_v35 = vsel %vm106_vm0, %v281_v31, 0.0 }
 0x138   :  { %v254_v30 = vpop.f32.mrf.mxu2  ;;  %294 = vadd.xlane.f32.xlu2 %v293_v29  ;;  %v381_v38 = vsel %vm106_vm0, %v369_v34, 0.0 }
 0x139   :  { %v255_v32 = vadd.f32 %v254_v30, %v201_v28 }
 0x13b   :  { %v1520_v36 = vadd.f32 %v1473_v2, %v255_v32 }
 0x13d   :  { %v282_v40 = vmul.f32 %v1520_v36, %v1520_v36  ;;  %v314_v42 = vsel %vm278_vm2, %v1520_v36, 0.0  ;;  %v296_v43 = vsel %vm106_vm0, %v1520_v36, 0.0 }
 0x13e   :  { %350 = vadd.xlane.f32.xlu0 %v349_v35  ;;  %v328_v46 = vsel %vm106_vm0, %v314_v42, 0.0 }
 0x13f   :  { %326 = vadd.xlane.f32.xlu1 %v325_v37  ;;  %v352_v44 = vsel %vm106_vm0, %v282_v40, 0.0  ;;  %v370_v47 = vsel %vm278_vm2, %v282_v40, 0.0 }
 0x140   :  { %v257_v39 = vpop.f32.mrf.mxu2  ;;  %382 = vadd.xlane.f32.xlu2 %v381_v38  ;;  %v384_v50 = vsel %vm106_vm0, %v370_v47, 0.0 }
 0x141   :  { %v258_v41 = vadd.f32 %v257_v39, %v204_v61 }
 0x143   :  { %v1533_v45 = vadd.f32 %v1473_v2, %v258_v41 }
 0x145   :  { %v283_v49 = vmul.f32 %v1533_v45, %v1533_v45  ;;  %v299_v51 = vsel %vm106_vm0, %v1533_v45, 0.0  ;;  %v315_v54 = vsel %vm278_vm2, %v1533_v45, 0.0 }
 0x146   :  { %297 = vadd.xlane.f32.xlu0 %v296_v43  ;;  %v331_v59 = vsel %vm106_vm0, %v315_v54, 0.0 }
 0x147   :  { %353 = vadd.xlane.f32.xlu1 %v352_v44  ;;  %v355_v53 = vsel %vm106_vm0, %v283_v49, 0.0  ;;  %v371_v56 = vsel %vm278_vm2, %v283_v49, 0.0  ;;  %v1258_v44 = vld [vmem:[%s2170_s2 + $0x58] sm:$0xff] }
 0x148   :  { %329 = vadd.xlane.f32.xlu2 %v328_v46  ;;  %v259_v48 = vpop.f32.mrf.mxu2  ;;  %v387_v60 = vsel %vm106_vm0, %v371_v56, 0.0  ;;  %774 = vmatpush.bf16.msrb.mxu3 %v1258_v44 }
 0x149   :  { %v260_v52 = vadd.f32 %v259_v48, %v1466_v62 }
 0x14b   :  { %v1549_v55 = vadd.f32 %v1473_v2, %v260_v52 }
 0x14d   :  { %v302_v61 = vsel %vm106_vm0, %v1549_v55, 0.0  ;;  %v284_v62 = vmul.f32 %v1549_v55, %v1549_v55  ;;  %v316_v0 = vsel %vm278_vm2, %v1549_v55, 0.0 }
 0x14e   :  { %385 = vadd.xlane.f32.xlu0 %v384_v50  ;;  %v334_v7 = vsel %vm106_vm0, %v316_v0, 0.0 }
 0x14f   :  { %300 = vadd.xlane.f32.xlu1 %v299_v51  ;;  %v372_v3 = vsel %vm278_vm2, %v284_v62, 0.0  ;;  %v358_v4 = vsel %vm106_vm0, %v284_v62, 0.0  ;;  %v1257_v51 = vld [vmem:[%s2170_s2 + $0x50] sm:$0xff]  ;;  %v1256_v62 = vld [vmem:[%s2170_s2 + $0x48] sm:$0xff] }
 0x150   :  { %356 = vadd.xlane.f32.xlu2 %v355_v53  ;;  %v262_v58 = vpop.f32.mrf.mxu2  ;;  %v390_v10 = vsel %vm106_vm0, %v372_v3, 0.0  ;;  %775 = vmatpush.bf16.msrb.mxu3 %v1257_v51 }
 0x151   :  { %v263_v63 = vadd.f32 %v262_v58, %v209_v57 }
 0x153   :  { %v1566_v6 = vadd.f32 %v1473_v2, %v263_v63 }
 0x154   :  { %776 = vmatpush.bf16.msrb.mxu3 %v1256_v62 }
 0x155   :  { %v285_v12 = vmul.f32 %v1566_v6, %v1566_v6  ;;  %v317_v13 = vsel %vm278_vm2, %v1566_v6, 0.0  ;;  %v305_v14 = vsel %vm106_vm0, %v1566_v6, 0.0 }
 0x156   :  { %332 = vadd.xlane.f32.xlu0 %v331_v59  ;;  %v337_v18 = vsel %vm106_vm0, %v317_v13, 0.0 }
 0x157   :  { %388 = vadd.xlane.f32.xlu1 %v387_v60  ;;  %v361_v17 = vsel %vm106_vm0, %v285_v12, 0.0  ;;  %v373_v23 = vsel %vm278_vm2, %v285_v12, 0.0 }
 0x158   :  { %303 = vadd.xlane.f32.xlu2 %v302_v61  ;;  %v264_v9 = vpop.f32.mrf.mxu2  ;;  %v393_v26 = vsel %vm106_vm0, %v373_v23, 0.0 }
 0x159   :  { %v265_v11 = vadd.f32 %v264_v9, %v211_v8  ;;  %v1255_v9 = vld [vmem:[%s2170_s2 + $0x40] sm:$0xff] }
 0x15a   :  { %777 = vmatpush.bf16.msrb.mxu3 %v1255_v9 }
 0x15b   :  { %v1578_v16 = vadd.f32 %v1473_v2, %v265_v11 }
 0x15d   :  { %v318_v19 = vsel %vm278_vm2, %v1578_v16, 0.0  ;;  %v286_v20 = vmul.f32 %v1578_v16, %v1578_v16  ;;  %v308_v2 = vsel %vm106_vm0, %v1578_v16, 0.0 }
 0x15e   :  { %359 = vadd.xlane.f32.xlu0 %v358_v4  ;;  %v340_v21 = vsel %vm106_vm0, %v318_v19, 0.0 }
 0x15f   :  { %335 = vadd.xlane.f32.xlu1 %v334_v7  ;;  %v364_v22 = vsel %vm106_vm0, %v286_v20, 0.0  ;;  %v374_v25 = vsel %vm278_vm2, %v286_v20, 0.0 }
 0x160   :  { %391 = vadd.xlane.f32.xlu2 %v390_v10  ;;  %v396_v27 = vsel %vm106_vm0, %v374_v25, 0.0 }
 0x166   :  { %306 = vadd.xlane.f32.xlu0 %v305_v14 }
 0x167   :  { %362 = vadd.xlane.f32.xlu1 %v361_v17 }
 0x168   :  { %338 = vadd.xlane.f32.xlu2 %v337_v18 }
 0x16e   :  { %341 = vadd.xlane.f32.xlu0 %v340_v21 }
 0x16f   :  { %309 = vadd.xlane.f32.xlu1 %v308_v2 }
 0x170   :  { %365 = vadd.xlane.f32.xlu2 %v364_v22 }
 0x176   :  { %394 = vadd.xlane.f32.xlu0 %v393_v26 }
 0x177   :  { %397 = vadd.xlane.f32.xlu1 %v396_v27 }
 0x199   :  { %v289_v28 = vpop.xlane.xlu0 %288 }
 0x19a   :  { %v321_v29 = vpop.xlane.xlu1 %320 }
 0x19b   :  { %v345_v30 = vpop.xlane.xlu2 %344  ;;  %v407_v31 = vsub.f32 %v289_v28, %v321_v29  ;;  %v1597_v32 = vmul.f32 0.03125, %v321_v29 }
 0x19d   :  { %v1599_v33 = vmul.f32 0.03125, %v407_v31  ;;  %v431_v35 = vmul.f32 %v1597_v32, %v1597_v32 }
 0x19f   :  { %v471_v41 = vmul.f32 %v1599_v33, %v1599_v33 }
 0x1a1   :  { %v377_v34 = vpop.xlane.xlu0 %376 }
 0x1a2   :  { %v423_v37 = vmul.f32 0.03125, %v377_v34  ;;  %v455_v38 = vsub.f32 %v345_v30, %v377_v34  ;;  %v324_v39 = vpop.xlane.xlu1 %323 }
 0x1a3   :  { %v348_v40 = vpop.xlane.xlu2 %347  ;;  %v1608_v48 = vmul.f32 0.03125, %v324_v39 }
 0x1a4   :  { %v439_v42 = vsub.f32 %v423_v37, %v431_v35  ;;  %v463_v43 = vmul.f32 0.03125, %v455_v38 }
 0x1a5   :  { %v432_v57 = vmul.f32 %v1608_v48, %v1608_v48 }
 0x1a6   :  { %v447_v46 = vmax.f32 %v439_v42, 0.0  ;;  %v479_v47 = vsub.f32 %v463_v43, %v471_v41 }
 0x1a8   :  { %v487_v49 = vmax.f32 %v479_v47, 0.0  ;;  %v1610_v50 = vadd.f32 1e-05, %v447_v46  ;;  %v671_v46 = vsel %vm278_vm2, %v1597_v32, %v1599_v33 }
 0x1a9   :  { %v292_v52 = vpop.xlane.xlu0 %291 }
 0x1aa   :  { %1278 = vrsqrt.f32 %v1610_v50  ;;  %v1616_v53 = vadd.f32 1e-05, %v487_v49  ;;  %v408_v54 = vsub.f32 %v292_v52, %v324_v39  ;;  %v380_v56 = vpop.xlane.xlu1 %379  ;;  %vm509_vm7 = vweird.f32 %v1610_v50 }
 0x1ab   :  { %v424_v58 = vmul.f32 0.03125, %v380_v56  ;;  %v456_v59 = vsub.f32 %v348_v40, %v380_v56  ;;  %v295_v60 = vpop.xlane.xlu2 %294 }
 0x1ac   :  { %1280 = vrsqrt.f32 %v1616_v53  ;;  %v1621_v61 = vmul.f32 0.03125, %v408_v54  ;;  %vm597_vm4 = vweird.f32 %v1616_v53 }
 0x1ad   :  { %v440_v63 = vsub.f32 %v424_v58, %v432_v57  ;;  %v464_v0 = vmul.f32 0.03125, %v456_v59 }
 0x1ae   :  { %v472_v3 = vmul.f32 %v1621_v61, %v1621_v61 }
 0x1af   :  { %v448_v4 = vmax.f32 %v440_v63, 0.0 }
 0x1b0   :  { %v1628_v7 = vpop.eup %1278  ;;  %v480_v8 = vsub.f32 %v464_v0, %v472_v3  ;;  %v687_v0 = vsub.f32 %v1477_v5, %v671_v46 }
 0x1b1   :  { %v504_v10 = vmul.f32 %v1628_v7, %v1610_v50  ;;  %v1635_v11 = vadd.f32 1e-05, %v448_v4  ;;  %v351_v12 = vpop.xlane.xlu0 %350  ;;  %vm510_vm5 = vweird.f32 %v1628_v7 }
 0x1b2   :  { %v1281_v13 = vpop.eup %1280  ;;  %v488_v14 = vmax.f32 %v480_v8, 0.0  ;;  %v327_v17 = vpop.xlane.xlu1 %326  ;;  %vm511_vm8 = vmor %vm509_vm7, %vm510_vm5 }
 0x1b3   :  { %v505_v18 = vmul.f32 %v1628_v7, %v504_v10  ;;  %v592_v19 = vmul.f32 %v1281_v13, %v1616_v53  ;;  %1282 = vrsqrt.f32 %v1635_v11  ;;  %v383_v20 = vpop.xlane.xlu2 %382  ;;  %v1642_v2 = vmul.f32 0.03125, %v327_v17 }
 0x1b4   :  { %v1640_v21 = vadd.f32 1e-05, %v488_v14  ;;  %v409_v22 = vsub.f32 %v295_v60, %v327_v17  ;;  %v425_v26 = vmul.f32 0.03125, %v383_v20  ;;  %v457_v27 = vsub.f32 %v351_v12, %v383_v20 }
 0x1b5   :  { %v506_v23 = vmul.f32 0.5, %v505_v18  ;;  %v593_v25 = vmul.f32 %v1281_v13, %v592_v19  ;;  %v433_v29 = vmul.f32 %v1642_v2, %v1642_v2  ;;  %vm598_vm3 = vweird.f32 %v1281_v13 }
 0x1b6   :  { %1284 = vrsqrt.f32 %v1640_v21  ;;  %v1645_v28 = vmul.f32 0.03125, %v409_v22  ;;  %v465_v31 = vmul.f32 0.03125, %v457_v27  ;;  %vm1666_vm6 = vmor %vm597_vm4, %vm598_vm3  ;;  %vm519_vm11 = vweird.f32 %v1635_v11  ;;  %v1706_v27 = vld [vmem:[%s2171_s3 + $0x2] ss:$0 sm:$0xff] }
 0x1b7   :  { %v594_v30 = vmul.f32 0.5, %v593_v25  ;;  %v441_v35 = vsub.f32 %v425_v26, %v433_v29  ;;  %v507_v38 = vsub.f32 1.5, %v506_v23  ;;  %vm607_vm13 = vweird.f32 %v1640_v21 }
 0x1b8   :  { %v473_v34 = vmul.f32 %v1645_v28, %v1645_v28 }
 0x1b9   :  { %v1651_v37 = vpop.eup %1282  ;;  %v595_v39 = vsub.f32 1.5, %v594_v30  ;;  %v298_v40 = vpop.xlane.xlu0 %297  ;;  %v449_v42 = vmax.f32 %v441_v35, 0.0  ;;  %v508_v57 = vmul.f32 %v1628_v7, %v507_v38 }
 0x1ba   :  { %v514_v41 = vmul.f32 %v1651_v37, %v1635_v11  ;;  %v481_v43 = vsub.f32 %v465_v31, %v473_v34  ;;  %v354_v44 = vpop.xlane.xlu1 %353  ;;  %vm520_vm9 = vweird.f32 %v1651_v37 }
 0x1bb   :  { %v596_v47 = vmul.f32 %v1281_v13, %v595_v39  ;;  %v330_v49 = vpop.xlane.xlu2 %329  ;;  %v1661_v56 = vadd.f32 1e-05, %v449_v42  ;;  %v512_v8 = vsel %vm511_vm8, %v1628_v7, %v508_v57  ;;  %v672_v7 = vsel %vm278_vm2, %v1608_v48, %v1621_v61  ;;  %vm521_vm12 = vmor %vm519_vm11, %vm520_vm9 }
 0x1bc   :  { %v1285_v51 = vpop.eup %1284  ;;  %v515_v52 = vmul.f32 %v1651_v37, %v514_v41  ;;  %v489_v54 = vmax.f32 %v481_v43, 0.0  ;;  %v410_v59 = vsub.f32 %v298_v40, %v330_v49  ;;  %v1671_v53 = vmul.f32 0.03125, %v330_v49 }
 0x1bd   :  { %v602_v58 = vmul.f32 %v1285_v51, %v1640_v21  ;;  %1286 = vrsqrt.f32 %v1661_v56  ;;  %v600_v60 = vsel %vm1666_vm6, %v1281_v13, %v596_v47  ;;  %vm608_vm10 = vweird.f32 %v1285_v51 }
 0x1be   :  { %v516_v33 = vmul.f32 0.5, %v515_v52  ;;  %v1676_v63 = vadd.f32 1e-05, %v489_v54  ;;  %v1679_v4 = vmul.f32 0.03125, %v410_v59  ;;  %v679_v10 = vsel %vm278_vm2, %v512_v8, %v600_v60  ;;  %vm609_vm14 = vmor %vm607_vm13, %vm608_vm10 }
 0x1bf   :  { %v603_v62 = vmul.f32 %v1285_v51, %v602_v58  ;;  %v434_v12 = vmul.f32 %v1671_v53, %v1671_v53  ;;  %v695_v61 = vmul.f32 %v687_v0, %v679_v10  ;;  %v688_v31 = vsub.f32 %v1491_v15, %v672_v7 }
 0x1c0   :  { %v517_v3 = vsub.f32 1.5, %v516_v33  ;;  %1288 = vrsqrt.f32 %v1676_v63  ;;  %v474_v22 = vmul.f32 %v1679_v4, %v1679_v4  ;;  %vm529_vm15 = vweird.f32 %v1661_v56 }
 0x1c1   :  { %v604_v9 = vmul.f32 0.5, %v603_v62  ;;  %v386_v50 = vpop.xlane.xlu0 %385  ;;  %vm617_vm3 = vweird.f32 %v1676_v63 }
 0x1c2   :  { %v426_v13 = vmul.f32 0.03125, %v386_v50  ;;  %v458_v5 = vsub.f32 %v354_v44, %v386_v50  ;;  %v301_v14 = vpop.xlane.xlu1 %300  ;;  %v518_v17 = vmul.f32 %v1651_v37, %v517_v3  ;;  %v704_v44 = vmul.f32 %v1706_v27, %v695_v61 }
 0x1c3   :  { %v605_v18 = vsub.f32 1.5, %v604_v9  ;;  %v357_v19 = vpop.xlane.xlu2 %356  ;;  %v1693_v20 = vpop.eup %1286  ;;  %v1744_v50 = vsel %vm278_vm2, %v1642_v2, %v1645_v28 }
 0x1c4   :  { %v442_v23 = vsub.f32 %v426_v13, %v434_v12  ;;  %v466_v25 = vmul.f32 0.03125, %v458_v5  ;;  %v524_v48 = vmul.f32 %v1693_v20, %v1661_v56  ;;  %v522_v34 = vsel %vm521_vm12, %v1651_v37, %v518_v17 }
 0x1c5   :  { %v606_v26 = vmul.f32 %v1285_v51, %v605_v18  ;;  %vm530_vm4 = vweird.f32 %v1693_v20 }
 0x1c6   :  { %v450_v11 = vmax.f32 %v442_v23, 0.0  ;;  %v482_v29 = vsub.f32 %v466_v25, %v474_v22  ;;  %v1708_v30 = vpop.eup %1288  ;;  %v525_v40 = vmul.f32 %v1693_v20, %v524_v48  ;;  %vm531_vm7 = vmor %vm529_vm15, %vm530_vm4 }
 0x1c7   :  { %v610_v35 = vsel %vm609_vm14, %v1285_v51, %v606_v26  ;;  %v612_v38 = vmul.f32 %v1708_v30, %v1676_v63  ;;  %v1728_v51 = vld [vmem:[%s2171_s3 + $0x3] ss:$0 sm:$0xff]  ;;  %vm618_vm5 = vweird.f32 %v1708_v30 }
 0x1c8   :  { %v680_v21 = vsel %vm278_vm2, %v522_v34, %v610_v35  ;;  %v490_v39 = vmax.f32 %v482_v29, 0.0  ;;  %v1717_v41 = vadd.f32 1e-05, %v450_v11  ;;  %v526_v59 = vmul.f32 0.5, %v525_v40  ;;  %vm1774_vm6 = vmor %vm617_vm3, %vm618_vm5 }
 0x1c9   :  { %v333_v42 = vpop.xlane.xlu0 %332  ;;  %v696_v43 = vmul.f32 %v688_v31, %v680_v21  ;;  %v613_v15 = vmul.f32 %v1708_v30, %v612_v38  ;;  %v713_v0 = vadd.f32 %v1728_v51, %v704_v44 }
 0x1ca   :  { %v1721_v46 = vadd.f32 1e-05, %v490_v39  ;;  %v1723_v37 = vmul.f32 0.03125, %v333_v42  ;;  %v411_v47 = vsub.f32 %v301_v14, %v333_v42  ;;  %v389_v49 = vpop.xlane.xlu1 %388  ;;  %1290 = vrsqrt.f32 %v1717_v41 }
 0x1cb   :  { %v427_v52 = vmul.f32 0.03125, %v389_v49  ;;  %v304_v54 = vpop.xlane.xlu2 %303  ;;  %v614_v57 = vmul.f32 0.5, %v613_v15  ;;  %v459_v33 = vsub.f32 %v357_v19, %v389_v49  ;;  %v705_v60 = vmul.f32 %v1706_v27, %v696_v43 }
 0x1cc   :  { %1292 = vrsqrt.f32 %v1721_v46  ;;  %v1732_v58 = vmul.f32 0.03125, %v411_v47  ;;  %v435_v32 = vmul.f32 %v1723_v37, %v1723_v37  ;;  %v527_v13 = vsub.f32 1.5, %v526_v59 }
 0x1cd   :  { %v615_v3 = vsub.f32 1.5, %v614_v57  ;;  %v467_v9 = vmul.f32 0.03125, %v459_v33  ;;  %v714_v10 = vadd.f32 %v1728_v51, %v705_v60  ;;  %v721_v18 = vmax.f32 %v713_v0, 0.0 }
 0x1ce   :  { %v475_v62 = vmul.f32 %v1732_v58, %v1732_v58  ;;  %v443_v8 = vsub.f32 %v427_v52, %v435_v32  ;;  %v528_v34 = vmul.f32 %v1693_v20, %v527_v13  ;;  %v689_v32 = vsub.f32 %v1502_v24, %v1744_v50 }
 0x1cf   :  { %v722_v19 = vmax.f32 %v714_v10, 0.0  ;;  %v616_v22 = vmul.f32 %v1708_v30, %v615_v3  ;;  %vm627_vm9 = vweird.f32 %v1721_v46  ;;  %vm539_vm12 = vweird.f32 %v1717_v41 }
 0x1d0   :  { %v1749_v12 = vpop.eup %1290  ;;  %v451_v5 = vmax.f32 %v443_v8, 0.0  ;;  %v483_v14 = vsub.f32 %v467_v9, %v475_v62 }
 0x1d1   :  { %v360_v7 = vpop.xlane.xlu0 %359  ;;  %v534_v2 = vmul.f32 %v1749_v12, %v1717_v41  ;;  %v729_v31 = vpack.c.bf16 %v722_v19, %v721_v18  ;;  %v620_v44 = vsel %vm1774_vm6, %v1708_v30, %v616_v22  ;;  %vm540_vm10 = vweird.f32 %v1749_v12 }
 0x1d2   :  { %v1752_v17 = vpop.eup %1292  ;;  %v336_v28 = vpop.xlane.xlu1 %335  ;;  %v491_v25 = vmax.f32 %v483_v14, 0.0  ;;  %v1760_v26 = vadd.f32 1e-05, %v451_v5  ;;  %v674_v14 = vsel %vm278_vm2, %v1671_v53, %v1679_v4  ;;  %vm541_vm13 = vmor %vm539_vm12, %vm540_vm10 }
 0x1d3   :  { %v622_v23 = vmul.f32 %v1752_v17, %v1721_v46  ;;  %v392_v48 = vpop.xlane.xlu2 %391  ;;  %v535_v61 = vmul.f32 %v1749_v12, %v534_v2  ;;  %v1763_v11 = vmul.f32 0.03125, %v336_v28  ;;  %v412_v29 = vsub.f32 %v304_v54, %v336_v28  ;;  %1222 = vmatmul.msk.bf16.vlgmr.msrb.gmra.mxu3 %vm106_vm0, %v729_v31 }
 0x1d4   :  { %1294 = vrsqrt.f32 %v1760_v26  ;;  %v1768_v21 = vadd.f32 1e-05, %v491_v25  ;;  %v428_v43 = vmul.f32 0.03125, %v392_v48  ;;  %v460_v63 = vsub.f32 %v360_v7, %v392_v48 }
 0x1d5   :  { %v623_v35 = vmul.f32 %v1752_v17, %v622_v23  ;;  %v536_v39 = vmul.f32 0.5, %v535_v61  ;;  %v1778_v40 = vmul.f32 0.03125, %v412_v29  ;;  %v436_v42 = vmul.f32 %v1763_v11, %v1763_v11 }
 0x1d6   :  { %1296 = vrsqrt.f32 %v1768_v21  ;;  %v532_v54 = vsel %vm531_vm7, %v1693_v20, %v528_v34  ;;  %vm628_vm8 = vweird.f32 %v1752_v17  ;;  %v468_v30 = vmul.f32 0.03125, %v460_v63 }
 0x1d7   :  { %v624_v15 = vmul.f32 0.5, %v623_v35  ;;  %v537_v47 = vsub.f32 1.5, %v536_v39  ;;  %v476_v49 = vmul.f32 %v1778_v40, %v1778_v40  ;;  %v444_v52 = vsub.f32 %v428_v43, %v436_v42  ;;  %vm1807_vm11 = vmor %vm627_vm9, %vm628_vm8 }
 0x1d8   :  { %v681_v60 = vsel %vm278_vm2, %v532_v54, %v620_v44  ;;  %v690_v22 = vsub.f32 %v1520_v36, %v674_v14  ;;  %vm549_vm14 = vweird.f32 %v1760_v26  ;;  %vm637_vm4 = vweird.f32 %v1768_v21 }
 0x1d9   :  { %v625_v57 = vsub.f32 1.5, %v624_v15  ;;  %v307_v59 = vpop.xlane.xlu0 %306  ;;  %v452_v33 = vmax.f32 %v444_v52, 0.0  ;;  %v538_v20 = vmul.f32 %v1749_v12, %v537_v47  ;;  %v484_v3 = vsub.f32 %v468_v30, %v476_v49 }
 0x1da   :  { %v1798_v56 = vpop.xlane.xlu1 %362  ;;  %v1802_v62 = vpop.eup %1294  ;;  %v697_v5 = vmul.f32 %v689_v32, %v681_v60  ;;  %v1868_v15 = vsel %vm278_vm2, %v1763_v11, %v1778_v40 }
 0x1db   :  { %v626_v0 = vmul.f32 %v1752_v17, %v625_v57  ;;  %v544_v24 = vmul.f32 %v1802_v62, %v1760_v26  ;;  %v1813_v46 = vadd.f32 1e-05, %v452_v33  ;;  %v339_v9 = vpop.xlane.xlu2 %338  ;;  %v492_v13 = vmax.f32 %v484_v3, 0.0 }
 0x1dc   :  { %v1815_v50 = vpop.eup %1296  ;;  %v542_v41 = vsel %vm541_vm13, %v1749_v12, %v538_v20  ;;  %v413_v18 = vsub.f32 %v307_v59, %v339_v9  ;;  %v706_v23 = vmul.f32 %v1706_v27, %v697_v5  ;;  %v1846_v48 = vmul.f32 0.03125, %v339_v9 }
 0x1dd   :  { %v630_v10 = vsel %vm1807_vm11, %v1752_v17, %v626_v0  ;;  %v545_v7 = vmul.f32 %v1802_v62, %v544_v24  ;;  %v632_v2 = vmul.f32 %v1815_v50, %v1768_v21  ;;  %1298 = vrsqrt.f32 %v1813_v46 }
 0x1de   :  { %v1834_v17 = vsel %vm278_vm2, %v1723_v37, %v1732_v58  ;;  %v1836_v28 = vadd.f32 1e-05, %v492_v13  ;;  %v682_v19 = vsel %vm278_vm2, %v542_v41, %v630_v10  ;;  %v1849_v29 = vmul.f32 0.03125, %v413_v18 }
 0x1df   :  { %v546_v53 = vmul.f32 0.5, %v545_v7  ;;  %v633_v4 = vmul.f32 %v1815_v50, %v632_v2  ;;  %v691_v37 = vsub.f32 %v1533_v45, %v1834_v17  ;;  %v698_v36 = vmul.f32 %v690_v22, %v682_v19 }
 0x1e0   :  { %1300 = vrsqrt.f32 %v1836_v28  ;;  %vm550_vm15 = vweird.f32 %v1802_v62  ;;  %vm638_vm3 = vweird.f32 %v1815_v50  ;;  %v715_v43 = vadd.f32 %v1728_v51, %v706_v23 }
 0x1e1   :  { %v342_v12 = vpop.xlane.xlu0 %341  ;;  %v547_v58 = vsub.f32 1.5, %v546_v53  ;;  %v634_v25 = vmul.f32 0.5, %v633_v4  ;;  %v707_v42 = vmul.f32 %v1706_v27, %v698_v36  ;;  %v437_v63 = vmul.f32 %v1846_v48, %v1846_v48  ;;  %vm1872_vm5 = vmor %vm637_vm4, %vm638_vm3 }
 0x1e2   :  { %v310_v61 = vpop.xlane.xlu1 %309  ;;  %v1851_v31 = vmul.f32 0.03125, %v342_v12  ;;  %v477_v54 = vmul.f32 %v1849_v29, %v1849_v29  ;;  %vm1886_vm6 = vmor %vm549_vm14, %vm550_vm15  ;;  %v723_v60 = vmax.f32 %v715_v43, 0.0  ;;  %vm559_vm9 = vweird.f32 %v1813_v46 }
 0x1e3   :  { %v1853_v34 = vpop.eup %1298  ;;  %v635_v35 = vsub.f32 1.5, %v634_v25  ;;  %v414_v45 = vsub.f32 %v310_v61, %v342_v12  ;;  %v548_v38 = vmul.f32 %v1802_v62, %v547_v58  ;;  %v716_v57 = vadd.f32 %v1728_v51, %v707_v42  ;;  %v366_v3 = vpop.xlane.xlu2 %365 }
 0x1e4   :  { %v554_v39 = vmul.f32 %v1853_v34, %v1813_v46  ;;  %v438_v21 = vmul.f32 %v1851_v31, %v1851_v31  ;;  %vm560_vm7 = vweird.f32 %v1853_v34  ;;  %vm647_vm11 = vweird.f32 %v1836_v28 }
 0x1e5   :  { %v636_v44 = vmul.f32 %v1815_v50, %v635_v35  ;;  %v1895_v59 = vmul.f32 0.03125, %v414_v45  ;;  %v552_v32 = vsel %vm1886_vm6, %v1802_v62, %v548_v38  ;;  %v724_v20 = vmax.f32 %v716_v57, 0.0  ;;  %vm1910_vm10 = vmor %vm559_vm9, %vm560_vm7 }
 0x1e6   :  { %v1301_v47 = vpop.eup %1300  ;;  %v555_v52 = vmul.f32 %v1853_v34, %v554_v39  ;;  %v692_v36 = vsub.f32 %v1549_v55, %v1868_v15 }
 0x1e7   :  { %v640_v40 = vsel %vm1872_vm5, %v1815_v50, %v636_v44  ;;  %v642_v30 = vmul.f32 %v1301_v47, %v1836_v28  ;;  %v730_v13 = vpack.c.bf16 %v724_v20, %v723_v60  ;;  %v478_v62 = vmul.f32 %v1895_v59, %v1895_v59 }
 0x1e8   :  { %v556_v33 = vmul.f32 0.5, %v555_v52  ;;  %v683_v50 = vsel %vm278_vm2, %v552_v32, %v640_v40  ;;  %vm648_vm8 = vweird.f32 %v1301_v47 }
 0x1e9   :  { %v395_v26 = vpop.xlane.xlu0 %394  ;;  %v643_v0 = vmul.f32 %v1301_v47, %v642_v30  ;;  %1223 = vmatmul.msk.bf16.gmra.mxu3 %vm106_vm0, %v730_v13  ;;  %vm649_vm12 = vmor %vm647_vm11, %vm648_vm8 }
 0x1ea   :  { %v429_v8 = vmul.f32 0.03125, %v395_v26  ;;  %v461_v24 = vsub.f32 %v1798_v56, %v395_v26  ;;  %v398_v9 = vpop.xlane.xlu1 %397  ;;  %v557_v10 = vsub.f32 1.5, %v556_v33  ;;  %v699_v56 = vmul.f32 %v691_v37, %v683_v50 }
 0x1eb   :  { %v430_v5 = vmul.f32 0.03125, %v398_v9  ;;  %v462_v14 = vsub.f32 %v366_v3, %v398_v9  ;;  %v644_v7 = vmul.f32 0.5, %v643_v0  ;;  %v677_v9 = vsel %vm278_vm2, %v1846_v48, %v1849_v29 }
 0x1ec   :  { %v445_v2 = vsub.f32 %v429_v8, %v437_v63  ;;  %v469_v41 = vmul.f32 0.03125, %v461_v24  ;;  %v558_v53 = vmul.f32 %v1853_v34, %v557_v10  ;;  %v708_v45 = vmul.f32 %v1706_v27, %v699_v56 }
 0x1ed   :  { %v446_v17 = vsub.f32 %v430_v5, %v438_v21  ;;  %v470_v18 = vmul.f32 0.03125, %v462_v14  ;;  %v645_v4 = vsub.f32 1.5, %v644_v7  ;;  %v678_v48 = vsel %vm278_vm2, %v1851_v31, %v1895_v59 }
 0x1ee   :  { %v453_v19 = vmax.f32 %v445_v2, 0.0  ;;  %v485_v22 = vsub.f32 %v469_v41, %v477_v54  ;;  %v562_v38 = vsel %vm1910_vm10, %v1853_v34, %v558_v53  ;;  %v717_v15 = vadd.f32 %v1728_v51, %v708_v45 }
 0x1ef   :  { %v454_v12 = vmax.f32 %v446_v17, 0.0  ;;  %v486_v23 = vsub.f32 %v470_v18, %v478_v62  ;;  %v646_v25 = vmul.f32 %v1301_v47, %v645_v4  ;;  %v693_v41 = vsub.f32 %v1566_v6, %v677_v9  ;;  %v1275_v9 = vld [vmem:[%s2171_s3 + $0x5] ss:$0 sm:$0xff] }
 0x1f0   :  { %v493_v61 = vmax.f32 %v485_v22, 0.0  ;;  %v501_v37 = vadd.f32 1e-05, %v453_v19  ;;  %v725_v21 = vmax.f32 %v717_v15, 0.0  ;;  %v694_v56 = vsub.f32 %v1578_v16, %v678_v48 }
 0x1f1   :  { %v494_v35 = vmax.f32 %v486_v23, 0.0  ;;  %v502_v46 = vadd.f32 1e-05, %v454_v12  ;;  %v650_v39 = vsel %vm649_vm12, %v1301_v47, %v646_v25 }
 0x1f2   :  { %1302 = vrsqrt.f32 %v501_v37  ;;  %v589_v42 = vadd.f32 1e-05, %v493_v61  ;;  %v684_v43 = vsel %vm278_vm2, %v562_v38, %v650_v39  ;;  %vm569_vm15 = vweird.f32 %v501_v37 }
 0x1f3   :  { %1304 = vrsqrt.f32 %v502_v46  ;;  %v590_v28 = vadd.f32 1e-05, %v494_v35  ;;  %v700_v55 = vmul.f32 %v692_v36, %v684_v43  ;;  %vm579_vm5 = vweird.f32 %v502_v46 }
 0x1f4   :  { %1306 = vrsqrt.f32 %v589_v42  ;;  %vm657_vm7 = vweird.f32 %v589_v42 }
 0x1f5   :  { %1308 = vrsqrt.f32 %v590_v28  ;;  %v709_v44 = vmul.f32 %v1706_v27, %v700_v55  ;;  %vm667_vm10 = vweird.f32 %v590_v28 }
 0x1f7   :  { %v718_v49 = vadd.f32 %v1728_v51, %v709_v44 }
 0x1f8   :  { %v1303_v63 = vpop.eup %1302 }
 0x1f9   :  { %v1305_v52 = vpop.eup %1304  ;;  %v564_v34 = vmul.f32 %v1303_v63, %v501_v37  ;;  %v726_v57 = vmax.f32 %v718_v49, 0.0  ;;  %vm570_vm13 = vweird.f32 %v1303_v63  ;;  %v1259_v37 = vld [vmem:[%s2170_s2 + $0x60] sm:$0xff] }
 0x1fa   :  { %v1307_v47 = vpop.eup %1306  ;;  %v574_v54 = vmul.f32 %v1305_v52, %v502_v46  ;;  %vm580_vm14 = vweird.f32 %v1305_v52  ;;  %vm1932_vm4 = vmor %vm569_vm15, %vm570_vm13  ;;  %843 = vmatpush.bf16.msrb.mxu1 %v1259_v37 }
 0x1fb   :  { %v1309_v11 = vpop.eup %1308  ;;  %v565_v40 = vmul.f32 %v1303_v63, %v564_v34  ;;  %v652_v30 = vmul.f32 %v1307_v47, %v589_v42  ;;  %v731_v26 = vpack.c.bf16 %v726_v57, %v725_v21  ;;  %vm658_vm3 = vweird.f32 %v1307_v47  ;;  %vm581_vm8 = vmor %vm579_vm5, %vm580_vm14 }
 0x1fc   :  { %v575_v32 = vmul.f32 %v1305_v52, %v574_v54  ;;  %v662_v33 = vmul.f32 %v1309_v11, %v590_v28  ;;  %vm668_vm6 = vweird.f32 %v1309_v11  ;;  %vm659_vm9 = vmor %vm657_vm7, %vm658_vm3 }
 0x1fd   :  { %v566_v60 = vmul.f32 0.5, %v565_v40  ;;  %v653_v20 = vmul.f32 %v1307_v47, %v652_v30  ;;  %1224 = vmatmul.msk.bf16.gmra.mxu3 %vm106_vm0, %v731_v26  ;;  %vm669_vm11 = vmor %vm667_vm10, %vm668_vm6 }
 0x1fe   :  { %v576_v0 = vmul.f32 0.5, %v575_v32  ;;  %v663_v3 = vmul.f32 %v1309_v11, %v662_v33 }
 0x1ff   :  { %v567_v8 = vsub.f32 1.5, %v566_v60  ;;  %v654_v24 = vmul.f32 0.5, %v653_v20 }
 0x200   :  { %v577_v50 = vsub.f32 1.5, %v576_v0  ;;  %v664_v10 = vmul.f32 0.5, %v663_v3 }
 0x201   :  { %v568_v13 = vmul.f32 %v1303_v63, %v567_v8  ;;  %v655_v5 = vsub.f32 1.5, %v654_v24 }
 0x202   :  { %v578_v7 = vmul.f32 %v1305_v52, %v577_v50  ;;  %v665_v62 = vsub.f32 1.5, %v664_v10 }
 0x203   :  { %v656_v29 = vmul.f32 %v1307_v47, %v655_v5  ;;  %v572_v17 = vsel %vm1932_vm4, %v1303_v63, %v568_v13 }
 0x204   :  { %v666_v2 = vmul.f32 %v1309_v11, %v665_v62  ;;  %v582_v53 = vsel %vm581_vm8, %v1305_v52, %v578_v7 }
 0x205   :  { %v660_v18 = vsel %vm659_vm9, %v1307_v47, %v656_v29 }
 0x206   :  { %v670_v4 = vsel %vm669_vm11, %v1309_v11, %v666_v2  ;;  %v685_v31 = vsel %vm278_vm2, %v572_v17, %v660_v18 }
 0x207   :  { %v686_v59 = vsel %vm278_vm2, %v582_v53, %v670_v4  ;;  %v701_v19 = vmul.f32 %v693_v41, %v685_v31 }
 0x208   :  { %v702_v22 = vmul.f32 %v694_v56, %v686_v59 }
 0x209   :  { %v710_v12 = vmul.f32 %v1706_v27, %v701_v19 }
 0x20a   :  { %v711_v6 = vmul.f32 %v1706_v27, %v702_v22 }
 0x20b   :  { %v719_v23 = vadd.f32 %v1728_v51, %v710_v12 }
 0x20c   :  { %v720_v58 = vadd.f32 %v1728_v51, %v711_v6  ;;  %v1274_v51 = vld [vmem:[%s2171_s3 + $0x4] ss:$0 sm:$0xff] }
 0x20d   :  { %v727_v25 = vmax.f32 %v719_v23, 0.0 }
 0x20e   :  { %v728_v16 = vmax.f32 %v720_v58, 0.0 }
 0x210   :  { %v732_v61 = vpack.c.bf16 %v728_v16, %v727_v25 }
 0x212   :  { %1225 = vmatmul.msk.bf16.gmra.mxu3 %vm106_vm0, %v732_v61  ;;  %vm865_vm0 = vcmask 130048  }
 0x256   :  { %v779_v27 = vpop.f32.mrf.mxu3 }
 0x257   :  { %v780_v36 = vadd.f32 %v1274_v51, %v779_v27 }
 0x259   :  { %v799_v45 = vmax.f32 %v780_v36, 0.0 }
 0x25e   :  { %v781_v35 = vpop.f32.mrf.mxu3 }
 0x25f   :  { %v782_v46 = vadd.f32 %v1274_v51, %v781_v35 }
 0x261   :  { %v800_v38 = vmax.f32 %v782_v46, 0.0 }
 0x263   :  { %v807_v39 = vpack.c.bf16 %v800_v38, %v799_v45 }
 0x265   :  { %1234 = vmatmul.msk.bf16.vlgmr.msrb.gmra.mxu1 %vm172_vm1, %v807_v39 }
 0x26c   :  { %v784_v42 = vpop.f32.mrf.mxu3 }
 0x26d   :  { %v785_v28 = vadd.f32 %v1274_v51, %v784_v42 }
 0x26f   :  { %v801_v44 = vmax.f32 %v785_v28, 0.0 }
 0x274   :  { %v786_v43 = vpop.f32.mrf.mxu3 }
 0x275   :  { %v787_v55 = vadd.f32 %v1274_v51, %v786_v43 }
 0x277   :  { %v802_v15 = vmax.f32 %v787_v55, 0.0 }
 0x279   :  { %v808_v63 = vpack.c.bf16 %v802_v15, %v801_v44 }
 0x27b   :  { %1235 = vmatmul.msk.bf16.gmra.mxu1 %vm172_vm1, %v808_v63 }
 0x280   :  { %v789_v49 = vpop.f32.mrf.mxu3 }
 0x281   :  { %v790_v52 = vadd.f32 %v1274_v51, %v789_v49 }
 0x283   :  { %v803_v54 = vmax.f32 %v790_v52, 0.0 }
 0x288   :  { %v791_v34 = vpop.f32.mrf.mxu3 }
 0x289   :  { %v792_v47 = vadd.f32 %v1274_v51, %v791_v34 }
 0x28b   :  { %v804_v21 = vmax.f32 %v792_v47, 0.0 }
 0x28d   :  { %v809_v57 = vpack.c.bf16 %v804_v21, %v803_v54 }
 0x28f   :  { %1236 = vmatmul.msk.bf16.gmra.mxu1 %vm172_vm1, %v809_v57 }
 0x295   :  { %v794_v11 = vpop.f32.mrf.mxu3 }
 0x296   :  { %v795_v40 = vadd.f32 %v1274_v51, %v794_v11 }
 0x298   :  { %v805_v33 = vmax.f32 %v795_v40, 0.0 }
 0x29d   :  { %v796_v30 = vpop.f32.mrf.mxu3 }
 0x29e   :  { %v797_v32 = vadd.f32 %v1274_v51, %v796_v30 }
 0x2a0   :  { %v806_v26 = vmax.f32 %v797_v32, 0.0 }
 0x2a2   :  { %v810_v60 = vpack.c.bf16 %v806_v26, %v805_v33 }
 0x2a4   :  { %1237 = vmatmul.msk.bf16.gmra.mxu1 %vm172_vm1, %v810_v60 }
 0x2e2   :  { %v845_v20 = vpop.f32.mrf.mxu1 }
 0x2e3   :  { %v2006_v25 = vadd.f32 %v1275_v9, %v845_v20 }
 0x2e5   :  { %v866_v61 = vsel %vm865_vm0, %v2006_v25, 0.0  ;;  %v890_v46 = vmul.f32 %v2006_v25, %v2006_v25 }
 0x2e7   :  { %v898_v45 = vsel %vm865_vm0, %v890_v46, 0.0 }
 0x2ea   :  { %v847_v0 = vpop.f32.mrf.mxu1 }
 0x2eb   :  { %v2012_v1 = vadd.f32 %v1275_v9, %v847_v0 }
 0x2ed   :  { %v891_v51 = vmul.f32 %v2012_v1, %v2012_v1  ;;  %v869_v35 = vsel %vm865_vm0, %v2012_v1, 0.0 }
 0x2ef   :  { %v901_v36 = vsel %vm865_vm0, %v891_v51, 0.0 }
 0x2f8   :  { %v850_v3 = vpop.f32.mrf.mxu1 }
 0x2f9   :  { %v1987_v56 = vadd.f32 %v1275_v9, %v850_v3 }
 0x2fb   :  { %v892_v22 = vmul.f32 %v1987_v56, %v1987_v56  ;;  %v872_v37 = vsel %vm865_vm0, %v1987_v56, 0.0 }
 0x2fd   :  { %v904_v6 = vsel %vm865_vm0, %v892_v22, 0.0 }
 0x300   :  { %v852_v8 = vpop.f32.mrf.mxu1 }
 0x301   :  { %v1983_v41 = vadd.f32 %v1275_v9, %v852_v8 }
 0x303   :  { %v875_v53 = vsel %vm865_vm0, %v1983_v41, 0.0  ;;  %v893_v16 = vmul.f32 %v1983_v41, %v1983_v41 }
 0x305   :  { %v907_v27 = vsel %vm865_vm0, %v893_v16, 0.0 }
 0x30c   :  { %v855_v24 = vpop.f32.mrf.mxu1 }
 0x30d   :  { %v1993_v31 = vadd.f32 %v1275_v9, %v855_v24 }
 0x30f   :  { %v894_v12 = vmul.f32 %v1993_v31, %v1993_v31  ;;  %v878_v58 = vsel %vm865_vm0, %v1993_v31, 0.0 }
 0x311   :  { %v910_v23 = vsel %vm865_vm0, %v894_v12, 0.0 }
 0x314   :  { %v857_v50 = vpop.f32.mrf.mxu1 }
 0x315   :  { %v1969_v10 = vadd.f32 %v1275_v9, %v857_v50 }
 0x317   :  { %v881_v13 = vsel %vm865_vm0, %v1969_v10, 0.0  ;;  %v895_v5 = vmul.f32 %v1969_v10, %v1969_v10 }
 0x318   :  { %882 = vadd.xlane.f32.xlu0 %v881_v13 }
 0x319   :  { %v913_v14 = vsel %vm865_vm0, %v895_v5, 0.0 }
 0x31a   :  { %914 = vadd.xlane.f32.xlu1 %v913_v14 }
 0x321   :  { %v860_v7 = vpop.f32.mrf.mxu1 }
 0x322   :  { %v1976_v62 = vadd.f32 %v1275_v9, %v860_v7 }
 0x324   :  { %v884_v48 = vsel %vm865_vm0, %v1976_v62, 0.0  ;;  %v896_v29 = vmul.f32 %v1976_v62, %v1976_v62 }
 0x325   :  { %885 = vadd.xlane.f32.xlu1 %v884_v48 }
 0x326   :  { %v916_v2 = vsel %vm865_vm0, %v896_v29, 0.0 }
 0x327   :  { %917 = vadd.xlane.f32.xlu2 %v916_v2 }
 0x329   :  { %v862_v17 = vpop.f32.mrf.mxu1 }
 0x32a   :  { %v1985_v18 = vadd.f32 %v1275_v9, %v862_v17 }
 0x32c   :  { %v897_v4 = vmul.f32 %v1985_v18, %v1985_v18  ;;  %v887_v19 = vsel %vm865_vm0, %v1985_v18, 0.0 }
 0x32d   :  { %876 = vadd.xlane.f32.xlu1 %v875_v53 }
 0x32e   :  { %v919_v59 = vsel %vm865_vm0, %v897_v4, 0.0 }
 0x32f   :  { %920 = vadd.xlane.f32.xlu0 %v919_v59  ;;  %888 = vadd.xlane.f32.xlu2 %v887_v19 }
 0x335   :  { %905 = vadd.xlane.f32.xlu1 %v904_v6 }
 0x337   :  { %911 = vadd.xlane.f32.xlu0 %v910_v23  ;;  %879 = vadd.xlane.f32.xlu2 %v878_v58 }
 0x33d   :  { %867 = vadd.xlane.f32.xlu1 %v866_v61 }
 0x33f   :  { %873 = vadd.xlane.f32.xlu0 %v872_v37  ;;  %908 = vadd.xlane.f32.xlu2 %v907_v27 }
 0x347   :  { %902 = vadd.xlane.f32.xlu0 %v901_v36  ;;  %870 = vadd.xlane.f32.xlu2 %v869_v35 }
 0x34f   :  { %899 = vadd.xlane.f32.xlu2 %v898_v45 }
 0x38b   :  { %v883_v38 = vpop.xlane.xlu0 %882 }
 0x38c   :  { %v2025_v39 = vmul.f32 0.0625, %v883_v38 }
 0x38d   :  { %v915_v42 = vpop.xlane.xlu1 %914 }
 0x38e   :  { %v943_v28 = vmul.f32 %v2025_v39, %v2025_v39  ;;  %v935_v43 = vmul.f32 0.0625, %v915_v42 }
 0x390   :  { %v951_v55 = vsub.f32 %v935_v43, %v943_v28 }
 0x392   :  { %v959_v44 = vmax.f32 %v951_v55, 0.0  ;;  %v967_v55 = vsub.f32 %v1969_v10, %v2025_v39 }
 0x394   :  { %v2031_v52 = vadd.f32 1e-05, %v959_v44 }
 0x396   :  { %1310 = vrsqrt.f32 %v2031_v52  ;;  %vm1034_vm13 = vweird.f32 %v2031_v52 }
 0x398   :  { %v886_v15 = vpop.xlane.xlu1 %885 }
 0x399   :  { %v2029_v63 = vmul.f32 0.0625, %v886_v15 }
 0x39a   :  { %v918_v49 = vpop.xlane.xlu2 %917 }
 0x39b   :  { %v944_v34 = vmul.f32 %v2029_v63, %v2029_v63  ;;  %v936_v47 = vmul.f32 0.0625, %v918_v49  ;;  %v968_v15 = vsub.f32 %v1976_v62, %v2029_v63 }
 0x39c   :  { %v2038_v32 = vpop.eup %1310 }
 0x39d   :  { %v952_v54 = vsub.f32 %v936_v47, %v944_v34  ;;  %v1029_v60 = vmul.f32 %v2038_v32, %v2031_v52  ;;  %vm1035_vm2 = vweird.f32 %v2038_v32 }
 0x39e   :  { %vm2079_vm15 = vmor %vm1034_vm13, %vm1035_vm2 }
 0x39f   :  { %v960_v21 = vmax.f32 %v952_v54, 0.0  ;;  %v1030_v5 = vmul.f32 %v2038_v32, %v1029_v60 }
 0x3a0   :  { %v877_v3 = vpop.xlane.xlu1 %876 }
 0x3a1   :  { %v976_v57 = vadd.f32 1e-05, %v960_v21  ;;  %v1031_v53 = vmul.f32 0.5, %v1030_v5  ;;  %v2053_v4 = vmul.f32 0.0625, %v877_v3 }
 0x3a2   :  { %v921_v11 = vpop.xlane.xlu0 %920  ;;  %v889_v40 = vpop.xlane.xlu2 %888 }
 0x3a3   :  { %1312 = vrsqrt.f32 %v976_v57  ;;  %v2036_v30 = vmul.f32 0.0625, %v889_v40  ;;  %v937_v33 = vmul.f32 0.0625, %v921_v11  ;;  %v1032_v61 = vsub.f32 1.5, %v1031_v53 }
 0x3a4   :  { %v941_v37 = vmul.f32 %v2053_v4, %v2053_v4  ;;  %vm1044_vm12 = vweird.f32 %v976_v57 }
 0x3a5   :  { %v945_v26 = vmul.f32 %v2036_v30, %v2036_v30  ;;  %v1033_v42 = vmul.f32 %v2038_v32, %v1032_v61 }
 0x3a7   :  { %v953_v20 = vsub.f32 %v937_v33, %v945_v26  ;;  %v1037_v63 = vsel %vm2079_vm15, %v2038_v32, %v1033_v42 }
 0x3a8   :  { %v906_v6 = vpop.xlane.xlu1 %905 }
 0x3a9   :  { %v2044_v0 = vpop.eup %1312  ;;  %v961_v24 = vmax.f32 %v953_v20, 0.0  ;;  %v932_v36 = vmul.f32 0.0625, %v906_v6 }
 0x3aa   :  { %v1039_v8 = vmul.f32 %v2044_v0, %v976_v57  ;;  %v912_v9 = vpop.xlane.xlu0 %911  ;;  %v880_v50 = vpop.xlane.xlu2 %879  ;;  %vm1045_vm1 = vweird.f32 %v2044_v0 }
 0x3ab   :  { %v2047_v13 = vmul.f32 0.0625, %v880_v50  ;;  %v977_v7 = vadd.f32 1e-05, %v961_v24  ;;  %v934_v48 = vmul.f32 0.0625, %v912_v9  ;;  %vm2073_vm14 = vmor %vm1044_vm12, %vm1045_vm1  ;;  %v1063_v50 = vmul.f32 %v1037_v63, %v967_v55 }
 0x3ac   :  { %v1040_v14 = vmul.f32 %v2044_v0, %v1039_v8  ;;  %v2103_v8 = vld [vmem:[%s2171_s3 + $0x6] ss:$0 sm:$0xff] }
 0x3ad   :  { %v942_v29 = vmul.f32 %v2047_v13, %v2047_v13  ;;  %1314 = vrsqrt.f32 %v977_v7  ;;  %vm1054_vm4 = vweird.f32 %v977_v7 }
 0x3ae   :  { %v1041_v2 = vmul.f32 0.5, %v1040_v14 }
 0x3af   :  { %v950_v17 = vsub.f32 %v934_v48, %v942_v29 }
 0x3b0   :  { %v1042_v12 = vsub.f32 1.5, %v1041_v2  ;;  %v868_v26 = vpop.xlane.xlu1 %867 }
 0x3b1   :  { %v958_v59 = vmax.f32 %v950_v17, 0.0 }
 0x3b2   :  { %v874_v19 = vpop.xlane.xlu0 %873  ;;  %v909_v22 = vpop.xlane.xlu2 %908  ;;  %v1043_v45 = vmul.f32 %v2044_v0, %v1042_v12  ;;  %v1072_v12 = vmul.f32 %v2103_v8, %v1063_v50 }
 0x3b3   :  { %v2055_v23 = vadd.f32 1e-05, %v958_v59  ;;  %v2057_v58 = vmul.f32 0.0625, %v874_v19  ;;  %v1315_v16 = vpop.eup %1314  ;;  %v933_v27 = vmul.f32 0.0625, %v909_v22 }
 0x3b4   :  { %v1049_v51 = vmul.f32 %v1315_v16, %v977_v7  ;;  %v1047_v10 = vsel %vm2073_vm14, %v2044_v0, %v1043_v45  ;;  %vm1055_vm3 = vweird.f32 %v1315_v16  ;;  %v969_v0 = vsub.f32 %v1985_v18, %v2036_v30  ;;  %v2110_v18 = vld [vmem:[%s2171_s3 + $0x7] ss:$0 sm:$0xff] }
 0x3b5   :  { %1316 = vrsqrt.f32 %v2055_v23  ;;  %v940_v35 = vmul.f32 %v2057_v58, %v2057_v58  ;;  %v949_v46 = vsub.f32 %v933_v27, %v941_v37  ;;  %vm1056_vm5 = vmor %vm1054_vm4, %vm1055_vm3  ;;  %v1064_v32 = vmul.f32 %v1047_v10, %v968_v15 }
 0x3b6   :  { %v1050_v38 = vmul.f32 %v1315_v16, %v1049_v51  ;;  %v2105_v7 = vmul.f32 0.0625, %v868_v26  ;;  %vm1024_vm7 = vweird.f32 %v2055_v23  ;;  %v966_v27 = vsub.f32 %v1993_v31, %v2047_v13 }
 0x3b7   :  { %v948_v28 = vsub.f32 %v932_v36, %v940_v35  ;;  %v957_v43 = vmax.f32 %v949_v46, 0.0  ;;  %v1073_v53 = vmul.f32 %v2103_v8, %v1064_v32  ;;  %v1081_v55 = vadd.f32 %v2110_v18, %v1072_v12 }
 0x3b8   :  { %v1051_v44 = vmul.f32 0.5, %v1050_v38  ;;  %v938_v37 = vmul.f32 %v2105_v7, %v2105_v7  ;;  %v965_v10 = vsub.f32 %v1983_v41, %v2053_v4  ;;  %v964_v26 = vsub.f32 %v1987_v56, %v2057_v58 }
 0x3b9   :  { %v956_v34 = vmax.f32 %v948_v28, 0.0  ;;  %v2077_v47 = vadd.f32 1e-05, %v957_v43  ;;  %v1082_v38 = vadd.f32 %v2110_v18, %v1073_v53 }
 0x3ba   :  { %v903_v54 = vpop.xlane.xlu0 %902  ;;  %v871_v21 = vpop.xlane.xlu2 %870  ;;  %v1052_v39 = vsub.f32 1.5, %v1051_v44  ;;  %v56_v44 = vld [vmem:[%s2171_s3 + $0x9] sm:$0x1] }
 0x3bb   :  { %v1317_v11 = vpop.eup %1316  ;;  %v2086_v62 = vmul.f32 0.0625, %v871_v21  ;;  %v2092_v57 = vadd.f32 1e-05, %v956_v34  ;;  %1318 = vrsqrt.f32 %v2077_v47  ;;  %v931_v60 = vmul.f32 0.0625, %v903_v54 }
 0x3bc   :  { %v1019_v52 = vmul.f32 %v1317_v11, %v2055_v23  ;;  %v1053_v33 = vmul.f32 %v1315_v16, %v1052_v39  ;;  %vm1025_vm6 = vweird.f32 %v1317_v11  ;;  %v1090_v34 = vmax.f32 %v1082_v38, 0.0 }
 0x3bd   :  { %v939_v20 = vmul.f32 %v2086_v62, %v2086_v62  ;;  %1320 = vrsqrt.f32 %v2092_v57  ;;  %vm1026_vm8 = vmor %vm1024_vm7, %vm1025_vm6  ;;  %v1352_v54 = vmov 0   ;;  %vm1014_vm11 = vweird.f32 %v2077_v47 }
 0x3be   :  { %v1020_v3 = vmul.f32 %v1317_v11, %v1019_v52  ;;  %v1057_v24 = vsel %vm1056_vm5, %v1315_v16, %v1053_v33  ;;  %1269 = vset.pattern.permute.xlu0 %v1352_v54  ;;  %vm1004_vm2 = vweird.f32 %v2092_v57  ;;  %v1089_v33 = vmax.f32 %v1081_v55, 0.0 }
 0x3bf   :  { %v947_v9 = vsub.f32 %v931_v60, %v939_v20  ;;  %v1065_v5 = vmul.f32 %v1057_v24, %v969_v0  ;;  %1094 = vperm.xlu0 %1269, %v56_v44   ;;  %vm1144_vm6 = vcmask 516096  }
 0x3c0   :  { %v1021_v14 = vmul.f32 0.5, %v1020_v3 }
 0x3c1   :  { %v955_v48 = vmax.f32 %v947_v9, 0.0  ;;  %v1319_v29 = vpop.eup %1318  ;;  %v1074_v30 = vmul.f32 %v2103_v8, %v1065_v5  ;;  %v963_v5 = vsub.f32 %v2012_v1, %v2086_v62  ;;  %v962_v1 = vsub.f32 %v2006_v25, %v2105_v7 }
 0x3c2   :  { %v1022_v2 = vsub.f32 1.5, %v1021_v14  ;;  %v900_v17 = vpop.xlane.xlu2 %899  ;;  %v1009_v59 = vmul.f32 %v1319_v29, %v2077_v47  ;;  %vm1015_vm9 = vweird.f32 %v1319_v29 }
 0x3c3   :  { %v2115_v19 = vadd.f32 1e-05, %v955_v48  ;;  %v930_v22 = vmul.f32 0.0625, %v900_v17  ;;  %v1321_v6 = vpop.eup %1320  ;;  %v1083_v16 = vadd.f32 %v2110_v18, %v1074_v30  ;;  %vm1016_vm1 = vmor %vm1014_vm11, %vm1015_vm9 }
 0x3c4   :  { %v1023_v61 = vmul.f32 %v1317_v11, %v1022_v2  ;;  %v999_v51 = vmul.f32 %v1321_v6, %v2092_v57  ;;  %v1010_v36 = vmul.f32 %v1319_v29, %v1009_v59  ;;  %vm1005_vm10 = vweird.f32 %v1321_v6 }
 0x3c5   :  { %1322 = vrsqrt.f32 %v2115_v19  ;;  %v1091_v35 = vmax.f32 %v1083_v16, 0.0  ;;  %v946_v45 = vsub.f32 %v930_v22, %v938_v37  ;;  %vm1006_vm12 = vmor %vm1004_vm2, %vm1005_vm10  ;;  %vm994_vm14 = vweird.f32 %v2115_v19 }
 0x3c6   :  { %v1027_v46 = vsel %vm1026_vm8, %v1317_v11, %v1023_v61  ;;  %v1000_v28 = vmul.f32 %v1321_v6, %v999_v51  ;;  %v1011_v23 = vmul.f32 0.5, %v1010_v36  ;;  %v55_v51 = vld [vmem:[%s2171_s3 + $0x8] sm:$0x1] }
 0x3c7   :  { %v1062_v42 = vmul.f32 %v1027_v46, %v966_v27  ;;  %v954_v43 = vmax.f32 %v946_v45, 0.0  ;;  %1238 = vmatpush.xpose.msk.msra.mxu2 %vm865_vm0, %v1091_v35 }
 0x3c8   :  { %v1001_v31 = vmul.f32 0.5, %v1000_v28  ;;  %v1012_v13 = vsub.f32 1.5, %v1011_v23 }
 0x3c9   :  { %v1071_v15 = vmul.f32 %v2103_v8, %v1062_v42  ;;  %v970_v49 = vadd.f32 1e-05, %v954_v43 }
 0x3ca   :  { %v1002_v11 = vsub.f32 1.5, %v1001_v31  ;;  %v1013_v40 = vmul.f32 %v1319_v29, %v1012_v13 }
 0x3cb   :  { %v1323_v21 = vpop.eup %1322  ;;  %1324 = vrsqrt.f32 %v970_v49  ;;  %1239 = vmatpush.xpose.msk.msra.mxu2 %vm865_vm0, %v1090_v34  ;;  %v1080_v60 = vadd.f32 %v2110_v18, %v1071_v15  ;;  %vm984_vm4 = vweird.f32 %v970_v49 }
 0x3cc   :  { %v989_v39 = vmul.f32 %v1323_v21, %v2115_v19  ;;  %v1003_v63 = vmul.f32 %v1321_v6, %v1002_v11  ;;  %v1017_v52 = vsel %vm1016_vm1, %v1319_v29, %v1013_v40  ;;  %vm995_vm13 = vweird.f32 %v1323_v21 }
 0x3cd   :  { %v1061_v20 = vmul.f32 %v1017_v52, %v965_v10  ;;  %v1088_v9 = vmax.f32 %v1080_v60, 0.0  ;;  %vm996_vm15 = vmor %vm994_vm14, %vm995_vm13 }
 0x3ce   :  { %v990_v47 = vmul.f32 %v1323_v21, %v989_v39  ;;  %v1007_v41 = vsel %vm1006_vm12, %v1321_v6, %v1003_v63 }
 0x3cf   :  { %v1060_v4 = vmul.f32 %v1007_v41, %v964_v26  ;;  %1240 = vmatpush.xpose.msk.msra.mxu2 %vm865_vm0, %v1089_v33  ;;  %v1070_v3 = vmul.f32 %v2103_v8, %v1061_v20 }
 0x3d0   :  { %v991_v0 = vmul.f32 0.5, %v990_v47 }
 0x3d1   :  { %v1325_v32 = vpop.eup %1324  ;;  %v1069_v57 = vmul.f32 %v2103_v8, %v1060_v4  ;;  %v1079_v56 = vadd.f32 %v2110_v18, %v1070_v3 }
 0x3d2   :  { %v992_v24 = vsub.f32 1.5, %v991_v0  ;;  %v979_v58 = vmul.f32 %v1325_v32, %v970_v49  ;;  %vm985_vm3 = vweird.f32 %v1325_v32 }
 0x3d3   :  { %1241 = vmatpush.xpose.msk.msra.mxu2 %vm865_vm0, %v1088_v9  ;;  %v1087_v29 = vmax.f32 %v1079_v56, 0.0  ;;  %v1078_v30 = vadd.f32 %v2110_v18, %v1069_v57  ;;  %vm986_vm5 = vmor %vm984_vm4, %vm985_vm3 }
 0x3d4   :  { %v993_v50 = vmul.f32 %v1323_v21, %v992_v24  ;;  %v980_v14 = vmul.f32 %v1325_v32, %v979_v58 }
 0x3d5   :  { %v1086_v19 = vmax.f32 %v1078_v30, 0.0 }
 0x3d6   :  { %v997_v48 = vsel %vm996_vm15, %v1323_v21, %v993_v50  ;;  %v981_v17 = vmul.f32 0.5, %v980_v14 }
 0x3d7   :  { %v1059_v2 = vmul.f32 %v997_v48, %v963_v5  ;;  %1242 = vmatpush.xpose.msk.msra.mxu2 %vm865_vm0, %v1087_v29 }
 0x3d8   :  { %v982_v59 = vsub.f32 1.5, %v981_v17 }
 0x3d9   :  { %v1068_v53 = vmul.f32 %v2103_v8, %v1059_v2 }
 0x3da   :  { %v983_v22 = vmul.f32 %v1325_v32, %v982_v59 }
 0x3db   :  { %v1077_v12 = vadd.f32 %v2110_v18, %v1068_v53  ;;  %1243 = vmatpush.xpose.msk.msra.mxu2 %vm865_vm0, %v1086_v19 }
 0x3dc   :  { %v987_v62 = vsel %vm986_vm5, %v1325_v32, %v983_v22 }
 0x3dd   :  { %v1085_v6 = vmax.f32 %v1077_v12, 0.0  ;;  %v1058_v16 = vmul.f32 %v987_v62, %v962_v1 }
 0x3df   :  { %1244 = vmatpush.xpose.msk.msra.mxu2 %vm865_vm0, %v1085_v6  ;;  %v1067_v61 = vmul.f32 %v2103_v8, %v1058_v16 }
 0x3e1   :  { %v1076_v37 = vadd.f32 %v2110_v18, %v1067_v61 }
 0x3e3   :  { %v1084_v27 = vmax.f32 %v1076_v37, 0.0 }
 0x3e5   :  { %1245 = vmatpush.xpose.msk.msra.mxu2 %vm865_vm0, %v1084_v27 }
 0x3e8   :  { %1246 = vmatmul.msk.f32.vlgmr.msra.gmra.mxu2 %vm865_vm0, %v55_v51 }
 0x431   :  { %v1095_v25 = vpop.permute.xlu0 %1094 }
 0x46b   :  { %v1141_v7 = vpop.f32.mrf.mxu2 }
 0x46c   :  { %v1142_v8 = vadd.f32 %v1141_v7, %v1095_v25 }
 0x46e   :  { %1145 = vst.msk [vmem:[#allocation2] sm:$0x1] %vm1144_vm6, %v1142_v8 }
 0x46f   :  { %1156 = dma.vmem_to_hbm [thread:$0]  %s1152_s13, 16, %s1154_s16, [#allocation3]  }
 0x470   :  { %1350 = dma.done.wait [#allocation3], 16  }
 0x471   :  { %1351 = vsyncadd [#allocation3], 4294967280 }
 0x472   :  { %1161 = vsyncpa [#allocation3], 1 }

</bundles_post_ra>
